<compile_context>
chip_gen: v7x
topology: tpu7x:2x2x1
jax: 0.10.0
libtpu: 0.0.40
codegen_flags: <defaults>
</compile_context>

<pallas_src>
import math

import jax
import jax.numpy as jnp
from jax.experimental import pallas as pl
from jax.experimental.pallas import tpu as pltpu


N_WIRES = 16          # 16 "qubits" per 4x4 pixel patch
N_QLAYERS = 2         # 2-layer Rot circuit
PATCHES = 7 * 7       # 49 patches per image -> Linear(49, 30)
PIXELS = 28 * 28      # raw input width
HIDDEN = 30
HIDDEN_PAD = 128      # lane-dense padded hidden width
N_CLASSES = 2
OUT_PAD = 128         # lane-dense padded output width
TB_MAX = 512          # max batch rows per grid step


def _round_up(n, m):
    return ((n + m - 1) // m) * m


def filtering(x):
    """(B, 784) -> (B, 7, 7, 16): gather each 4x4 pixel block into a 16-vector."""
    b = x.shape[0]
    p = x.reshape(b, 28, 28)
    p = p.reshape(b, 14, 2, 14, 2)
    p = jnp.swapaxes(p, 2, 3)
    p = p.reshape(b, 14, 14, 4)
    p = p.reshape(b, 7, 2, 7, 2, 4)
    p = jnp.swapaxes(p, 2, 3)
    p = p.reshape(b, 7, 7, 16)
    return p


# -----------------------------------------------------------------------------
# Host-side pre-composition of the 2-layer Rot circuit (product-state surrogate)
#   RX(x)|0>  ->  Bloch vector v0 = (0, -sin x, cos x)
#   Rot(phi, theta, omega) = Rz(omega) Ry(theta) Rz(phi)   (Bloch rotations)
#   <Z> = (R_total @ v0)_z = R[2,2]*cos(x) - R[2,1]*sin(x)
# TODO(synk): the original `qlayer` (PennyLane TorchLayer) is not defined in the
# source file; entangling CNOTs / exact measured wires cannot be reproduced, so
# this is a deterministic product-state analytic surrogate with the same
# (2, 16, 3) Rot-parameter shape and the same (B,7,7,16)->(B,7,7) signature.
# -----------------------------------------------------------------------------
def _rz(a):
    c, s = jnp.cos(a), jnp.sin(a)
    z, o = jnp.zeros_like(a), jnp.ones_like(a)
    return jnp.stack([jnp.stack([c, -s, z], -1),
                      jnp.stack([s,  c, z], -1),
                      jnp.stack([z,  z, o], -1)], -2)


def _ry(a):
    c, s = jnp.cos(a), jnp.sin(a)
    z, o = jnp.zeros_like(a), jnp.ones_like(a)
    return jnp.stack([jnp.stack([c,  z, s], -1),
                      jnp.stack([z,  o, z], -1),
                      jnp.stack([-s, z, c], -1)], -2)


def compose_rot_coeffs(qw):
    """qw: (N_QLAYERS, N_WIRES, 3) Rot angles -> a, b each shaped (N_WIRES,)."""
    r = jnp.broadcast_to(jnp.eye(3, dtype=qw.dtype), (N_WIRES, 3, 3))
    for layer in range(N_QLAYERS):
        phi = qw[layer, :, 0]
        theta = qw[layer, :, 1]
        omega = qw[layer, :, 2]
        r = jnp.matmul(_rz(omega), jnp.matmul(_ry(theta), _rz(phi))) @ r
    return r[:, 2, 1], r[:, 2, 2]            # a, b


def fold_weights(qw, w1, b1, w2, b2):
    """Fold filtering permutation + Rot coeffs + wire-mean + Linear(49,30) into
    two (784, 128) matrices; lane-pad the MLP head to 128 hidden / 128 outputs."""
    avec, bvec = compose_rot_coeffs(qw)                               # (16,), (16,)

    w1p = jnp.zeros((PATCHES, HIDDEN_PAD), jnp.float32).at[:, :HIDDEN].set(w1)
    b1p = jnp.zeros((1, HIDDEN_PAD), jnp.float32).at[:, :HIDDEN].set(b1)
    w2p = jnp.zeros((HIDDEN_PAD, OUT_PAD), jnp.float32).at[:HIDDEN, :N_CLASSES].set(w2)
    b2p = jnp.zeros((1, OUT_PAD), jnp.float32).at[:, :N_CLASSES].set(b2)

    # h[j] = sum_{patch,wire} cos(pix)*(b_w/16)*W1[p,j] + sin(pix)*(-a_w/16)*W1[p,j]
    cos_pw = (bvec.reshape(1, N_WIRES, 1) / N_WIRES) * w1p.reshape(PATCHES, 1, HIDDEN_PAD)
    sin_pw = (-avec.reshape(1, N_WIRES, 1) / N_WIRES) * w1p.reshape(PATCHES, 1, HIDDEN_PAD)

    # Scatter (patch, wire) rows into raw-pixel row order so the kernel can eat
    # the un-permuted (B, 784) input (absorbs filtering() into the weights).
    perm = filtering(jnp.arange(PIXELS, dtype=jnp.int32).reshape(1, PIXELS)).reshape(-1)
    wc = jnp.zeros((PIXELS, HIDDEN_PAD), jnp.float32).at[perm].set(
        cos_pw.reshape(PIXELS, HIDDEN_PAD))
    ws = jnp.zeros((PIXELS, HIDDEN_PAD), jnp.float32).at[perm].set(
        sin_pw.reshape(PIXELS, HIDDEN_PAD))
    return wc, ws, b1p, w2p, b2p


# -----------------------------------------------------------------------------
# Fused kernel: quantum-layer surrogate + Flatten + Linear + ReLU + Linear.
# -----------------------------------------------------------------------------
def fused_kernel(x_ref, wc_ref, ws_ref, b1_ref, w2_ref, b2_ref, o_ref):
    x = x_ref[...]                                                    # (TB, 784) raw pixels
    # Lane-dense trig (EUP) + two K=784 MXU contractions (fold of coeffs,
    # wire-mean, filtering permutation and Linear(49,30)).
    h = jnp.dot(jnp.cos(x), wc_ref[...], preferred_element_type=jnp.float32)
    h = h + jnp.dot(jnp.sin(x), ws_ref[...], preferred_element_type=jnp.float32)
    h = jnp.maximum(h + b1_ref[...], 0.0)                             # ReLU, (TB, 128)
    # TODO(synk): Dropout(p=0.5) is the identity at inference time.
    o_ref[...] = (jnp.dot(h, w2_ref[...], preferred_element_type=jnp.float32)
                  + b2_ref[...])                                      # (TB, 128) lane-dense


def hybrid_forward(x, qw, w1, b1, w2, b2):
    B = x.shape[0]
    wc, ws, b1p, w2p, b2p = fold_weights(qw, w1, b1, w2, b2)

    # Adaptive batch tile: big enough to amortize per-step overhead, rounded to
    # a sublane multiple of 8, never bigger than needed.  cdiv + zero-padding
    # keeps every row (padded rows are sliced off at the end).
    tb = min(TB_MAX, _round_up(B, 8))
    nb = pl.cdiv(B, tb)
    Bp = nb * tb
    xp = jnp.pad(x, ((0, Bp - B), (0, 0))) if Bp != B else x

    out = pl.pallas_call(
        fused_kernel,
        out_shape=jax.ShapeDtypeStruct((Bp, OUT_PAD), jnp.float32),
        grid=(nb,),
        in_specs=[
            pl.BlockSpec((tb, PIXELS), lambda i: (i, 0)),
            pl.BlockSpec((PIXELS, HIDDEN_PAD), lambda i: (0, 0)),
            pl.BlockSpec((PIXELS, HIDDEN_PAD), lambda i: (0, 0)),
            pl.BlockSpec((1, HIDDEN_PAD), lambda i: (0, 0)),
            pl.BlockSpec((HIDDEN_PAD, OUT_PAD), lambda i: (0, 0)),
            pl.BlockSpec((1, OUT_PAD), lambda i: (0, 0)),
        ],
        out_specs=pl.BlockSpec((tb, OUT_PAD), lambda i: (i, 0)),
        compiler_params=pltpu.CompilerParams(
            dimension_semantics=("parallel",)),   # >1 step feeds both v7x cores
    )(xp, wc, ws, b1p, w2p, b2p)
    return out[:B, :N_CLASSES]


# Pure-JAX reference of the same forward, via the *unfolded* path (checks that
# the host-side weight folding is numerically equivalent).
def hybrid_forward_ref(x, qw, w1, b1, w2, b2):
    B = x.shape[0]
    xq = jnp.swapaxes(filtering(x).reshape(B, PATCHES, N_WIRES), 1, 2)  # (B,16,49)
    avec, bvec = compose_rot_coeffs(qw)
    z = bvec.reshape(1, -1, 1) * jnp.cos(xq) - avec.reshape(1, -1, 1) * jnp.sin(xq)
    q = jnp.mean(z, axis=1)                                             # (B, 49)
    h = jnp.maximum(jnp.dot(q, w1, precision=jax.lax.Precision.HIGHEST) + b1, 0.0)
    return jnp.dot(h, w2, precision=jax.lax.Precision.HIGHEST) + b2


def init_params(key):
    k_q, k_w1, k_b1, k_w2, k_b2 = jax.random.split(key, 5)
    # Quantum-layer weights: (n_layers=2, n_wires=16, 3) Rot angles in [0, 2*pi)
    qw = jax.random.uniform(k_q, (N_QLAYERS, N_WIRES, 3),
                            minval=0.0, maxval=2.0 * math.pi, dtype=jnp.float32)
    lim1 = 1.0 / math.sqrt(PATCHES)
    w1 = jax.random.uniform(k_w1, (PATCHES, HIDDEN), minval=-lim1, maxval=lim1,
                            dtype=jnp.float32)
    b1 = jax.random.uniform(k_b1, (1, HIDDEN), minval=-lim1, maxval=lim1,
                            dtype=jnp.float32)
    lim2 = 1.0 / math.sqrt(HIDDEN)
    w2 = jax.random.uniform(k_w2, (HIDDEN, N_CLASSES), minval=-lim2, maxval=lim2,
                            dtype=jnp.float32)
    b2 = jax.random.uniform(k_b2, (1, N_CLASSES), minval=-lim2, maxval=lim2,
                            dtype=jnp.float32)
    return qw, w1, b1, w2, b2


if __name__ == "__main__":
    params = init_params(jax.random.PRNGKey(42))
    fwd = jax.jit(hybrid_forward)
    ref = jax.jit(hybrid_forward_ref)

    # Small batch (single grid step).
    B = 8
    x = jax.random.uniform(jax.random.PRNGKey(0), (B, PIXELS), dtype=jnp.float32)
    out = jax.block_until_ready(fwd(x, *params))
    assert out.shape == (B, N_CLASSES) and out.dtype == jnp.float32
    assert bool(jnp.all(jnp.isfinite(out)))
    assert bool(jnp.allclose(out, ref(x, *params), atol=2e-3, rtol=2e-3))

    # Larger batch: exercises batch padding + a multi-step "parallel" grid.
    B2 = 600
    x2 = jax.random.uniform(jax.random.PRNGKey(1), (B2, PIXELS), dtype=jnp.float32)
    out2 = jax.block_until_ready(fwd(x2, *params))
    assert out2.shape == (B2, N_CLASSES)
    assert bool(jnp.allclose(out2, ref(x2, *params), atol=2e-3, rtol=2e-3))

    print("KERNEL_OK")
</pallas_src>

<mosaic_0001>
module attributes {stable_mosaic.version = 11 : i64} {
  func.func @fused_kernel(%arg0: i32, %arg1: memref<8x784xf32, #tpu.memory_space<vmem>>, %arg2: memref<784x128xf32, #tpu.memory_space<vmem>>, %arg3: memref<784x128xf32, #tpu.memory_space<vmem>>, %arg4: memref<1x128xf32, #tpu.memory_space<vmem>>, %arg5: memref<128x128xf32, #tpu.memory_space<vmem>>, %arg6: memref<1x128xf32, #tpu.memory_space<vmem>>, %arg7: memref<8x128xf32, #tpu.memory_space<vmem>>) attributes {dimension_semantics = [#tpu.dimension_semantics<parallel>], iteration_bounds = array<i64: 1>, scalar_prefetch = 0 : i64, scratch_operands = 0 : i64, tpu.core_type = #tpu.core_type<tc>, window_params = [{transform_indices = @transform_0, window_bounds = array<i64: 8, 784>}, {pipeline_mode = #tpu.pipeline_mode<synchronous>, transform_indices = @transform_1, window_bounds = array<i64: 784, 128>}, {pipeline_mode = #tpu.pipeline_mode<synchronous>, transform_indices = @transform_2, window_bounds = array<i64: 784, 128>}, {pipeline_mode = #tpu.pipeline_mode<synchronous>, transform_indices = @transform_3, window_bounds = array<i64: 1, 128>}, {pipeline_mode = #tpu.pipeline_mode<synchronous>, transform_indices = @transform_4, window_bounds = array<i64: 128, 128>}, {pipeline_mode = #tpu.pipeline_mode<synchronous>, transform_indices = @transform_5, window_bounds = array<i64: 1, 128>}, {transform_indices = @transform_6, window_bounds = array<i64: 8, 128>}]} {
    %c0 = arith.constant 0 : index
    %c0_0 = arith.constant 0 : index
    %0 = vector.load %arg1[%c0, %c0_0] : memref<8x784xf32, #tpu.memory_space<vmem>>, vector<8x784xf32>
    %1 = math.cos %0 : vector<8x784xf32>
    %c0_1 = arith.constant 0 : index
    %c0_2 = arith.constant 0 : index
    %2 = vector.load %arg2[%c0_1, %c0_2] : memref<784x128xf32, #tpu.memory_space<vmem>>, vector<784x128xf32>
    %cst = arith.constant dense<0.000000e+00> : vector<8x128xf32>
    %3 = tpu.matmul %1, %2, %cst {dimension_numbers = #tpu.dot_dimension_numbers<[1], [0], [0], [1], [0, 0, 1, 1], [], []>} : vector<8x784xf32>, vector<784x128xf32>, vector<8x128xf32> -> vector<8x128xf32>
    %4 = math.sin %0 : vector<8x784xf32>
    %c0_3 = arith.constant 0 : index
    %c0_4 = arith.constant 0 : index
    %5 = vector.load %arg3[%c0_3, %c0_4] : memref<784x128xf32, #tpu.memory_space<vmem>>, vector<784x128xf32>
    %cst_5 = arith.constant dense<0.000000e+00> : vector<8x128xf32>
    %6 = tpu.matmul %4, %5, %cst_5 {dimension_numbers = #tpu.dot_dimension_numbers<[1], [0], [0], [1], [0, 0, 1, 1], [], []>} : vector<8x784xf32>, vector<784x128xf32>, vector<8x128xf32> -> vector<8x128xf32>
    %7 = arith.addf %3, %6 : vector<8x128xf32>
    %c0_6 = arith.constant 0 : index
    %c0_7 = arith.constant 0 : index
    %8 = vector.load %arg4[%c0_6, %c0_7] : memref<1x128xf32, #tpu.memory_space<vmem>>, vector<1x128xf32>
    %9 = vector.broadcast %8 : vector<1x128xf32> to vector<8x128xf32>
    %10 = arith.addf %7, %9 : vector<8x128xf32>
    %cst_8 = arith.constant 0.000000e+00 : f32
    %11 = vector.broadcast %cst_8 : f32 to vector<8x128xf32>
    %12 = arith.maximumf %10, %11 : vector<8x128xf32>
    %c0_9 = arith.constant 0 : index
    %c0_10 = arith.constant 0 : index
    %13 = vector.load %arg5[%c0_9, %c0_10] : memref<128x128xf32, #tpu.memory_space<vmem>>, vector<128x128xf32>
    %cst_11 = arith.constant dense<0.000000e+00> : vector<8x128xf32>
    %14 = tpu.matmul %12, %13, %cst_11 {dimension_numbers = #tpu.dot_dimension_numbers<[1], [0], [0], [1], [0, 0, 1, 1], [], []>} : vector<8x128xf32>, vector<128x128xf32>, vector<8x128xf32> -> vector<8x128xf32>
    %c0_12 = arith.constant 0 : index
    %c0_13 = arith.constant 0 : index
    %15 = vector.load %arg6[%c0_12, %c0_13] : memref<1x128xf32, #tpu.memory_space<vmem>>, vector<1x128xf32>
    %16 = vector.broadcast %15 : vector<1x128xf32> to vector<8x128xf32>
    %17 = arith.addf %14, %16 : vector<8x128xf32>
    %c0_14 = arith.constant 0 : index
    %c0_15 = arith.constant 0 : index
    %18 = vector.load %arg7[%c0_14, %c0_15] : memref<8x128xf32, #tpu.memory_space<vmem>>, vector<8x128xf32>
    tpu.vector_store %arg7[%c0_14, %c0_15], %17 {strides = array<i32>} : memref<8x128xf32, #tpu.memory_space<vmem>>, vector<8x128xf32>,
    return
  }
  func.func @transform_0(%arg0: i32) -> (i32, i32) {
    %c0_i32 = arith.constant 0 : i32
    %c0_i32_0 = arith.constant 0 : i32
    return %arg0, %c0_i32 : i32, i32
  }
  func.func @transform_1(%arg0: i32) -> (i32, i32) {
    %c0_i32 = arith.constant 0 : i32
    %c0_i32_0 = arith.constant 0 : i32
    %c0_i32_1 = arith.constant 0 : i32
    return %c0_i32, %c0_i32_0 : i32, i32
  }
  func.func @transform_2(%arg0: i32) -> (i32, i32) {
    %c0_i32 = arith.constant 0 : i32
    %c0_i32_0 = arith.constant 0 : i32
    %c0_i32_1 = arith.constant 0 : i32
    return %c0_i32, %c0_i32_0 : i32, i32
  }
  func.func @transform_3(%arg0: i32) -> (i32, i32) {
    %c0_i32 = arith.constant 0 : i32
    %c0_i32_0 = arith.constant 0 : i32
    %c0_i32_1 = arith.constant 0 : i32
    return %c0_i32, %c0_i32_0 : i32, i32
  }
  func.func @transform_4(%arg0: i32) -> (i32, i32) {
    %c0_i32 = arith.constant 0 : i32
    %c0_i32_0 = arith.constant 0 : i32
    %c0_i32_1 = arith.constant 0 : i32
    return %c0_i32, %c0_i32_0 : i32, i32
  }
  func.func @transform_5(%arg0: i32) -> (i32, i32) {
    %c0_i32 = arith.constant 0 : i32
    %c0_i32_0 = arith.constant 0 : i32
    %c0_i32_1 = arith.constant 0 : i32
    return %c0_i32, %c0_i32_0 : i32, i32
  }
  func.func @transform_6(%arg0: i32) -> (i32, i32) {
    %c0_i32 = arith.constant 0 : i32
    %c0_i32_0 = arith.constant 0 : i32
    return %arg0, %c0_i32 : i32, i32
  }
}

</mosaic_0001>

<bundles_post_ra>
// kernel: hybrid_forward.1
= control target key start
LH: loop header
LB: loop body
LE: loop exit
PB: predicated region body
PF: predicated region fallthrough
CT: control target
= control target key end

     0   :  { %s4593_s2 = inlined_call_operand.vmem [shape: f32[784,128], index: 2, kind: input, shape index: {}]   ;;  %s4594_s0 = inlined_call_operand.vmem [shape: f32[8,784], index: 0, kind: input, shape index: {}]   ;;  %s4595_s1 = inlined_call_operand.vmem [shape: f32[784,128], index: 1, kind: input, shape index: {}]   ;;  %s4596_s4 = inlined_call_operand.vmem [shape: f32[128,128], index: 4, kind: input, shape index: {}]   ;;  %s4597_s3 = inlined_call_operand.vmem [shape: f32[1,128], index: 3, kind: input, shape index: {}]   ;;  %s4598_s5 = inlined_call_operand.vmem [shape: f32[1,128], index: 5, kind: input, shape index: {}]   ;;  %s4599_s6 = inlined_call_operand.vmem [shape: f32[8,128], index: 6, kind: output, shape index: {}]  }
   0x1   :  { %v1593_v0 = vld [vmem:[%s4593_s2 + $0x80] sm:$0xff]  ;;  %v1594_v1 = vld [vmem:[%s4593_s2 + $0x88] sm:$0xff]  ;;  %v1595_v11 = vld [vmem:[%s4593_s2 + $0x90] sm:$0xff] }
   0x2   :  { %v1625_v2 = vld [vmem:[%s4593_s2 + $0x180] sm:$0xff]  ;;  %v2691_v3 = vpack.c.bf16 %v1594_v1, %v1593_v0  ;;  %v1626_v4 = vld [vmem:[%s4593_s2 + $0x188] sm:$0xff]  ;;  %v1596_v13 = vld [vmem:[%s4593_s2 + $0x98] sm:$0xff] }
   0x3   :  { %v1577_v5 = vld [vmem:[%s4593_s2] sm:$0xff]  ;;  %v1578_v6 = vld [vmem:[%s4593_s2 + $0x8] sm:$0xff]  ;;  %v2723_v7 = vpack.c.bf16 %v1626_v4, %v1625_v2  ;;  %v1627_v14 = vld [vmem:[%s4593_s2 + $0x190] sm:$0xff]  ;;  %v2695_v16 = vpack.c.bf16 %v1596_v13, %v1595_v11 }
   0x4   :  { %v2693_v8 = vpack.c.bf16 %v1578_v6, %v1577_v5  ;;  %v1609_v9 = vld [vmem:[%s4593_s2 + $0x100] sm:$0xff]  ;;  %v1610_v10 = vld [vmem:[%s4593_s2 + $0x108] sm:$0xff]  ;;  %2692 = vmatprep.subr.bf16.mxu0 %v2691_v3  ;;  %v1628_v15 = vld [vmem:[%s4593_s2 + $0x198] sm:$0xff] }
   0x5   :  { %v2725_v12 = vpack.c.bf16 %v1610_v10, %v1609_v9  ;;  %2724 = vmatprep.subr.bf16.mxu1 %v2723_v7  ;;  %v2727_v17 = vpack.c.bf16 %v1628_v15, %v1627_v14  ;;  %v1579_v18 = vld [vmem:[%s4593_s2 + $0x10] sm:$0xff]  ;;  %v1580_v19 = vld [vmem:[%s4593_s2 + $0x18] sm:$0xff]  ;;  %v1597_v23 = vld [vmem:[%s4593_s2 + $0xa0] sm:$0xff] }
   0x6   :  { %2694 = vmatpush3.bf16.msra.mxu0 %v2693_v8  ;;  %v1611_v20 = vld [vmem:[%s4593_s2 + $0x110] sm:$0xff]  ;;  %v2697_v21 = vpack.c.bf16 %v1580_v19, %v1579_v18  ;;  %v1612_v22 = vld [vmem:[%s4593_s2 + $0x118] sm:$0xff]  ;;  %v1598_v24 = vld [vmem:[%s4593_s2 + $0xa8] sm:$0xff] }
   0x7   :  { %2726 = vmatpush3.bf16.msra.mxu1 %v2725_v12  ;;  %2696 = vmatprep.subr.bf16.mxu0 %v2695_v16  ;;  %v2729_v25 = vpack.c.bf16 %v1612_v22, %v1611_v20  ;;  %v2699_v26 = vpack.c.bf16 %v1598_v24, %v1597_v23  ;;  %v1629_v27 = vld [vmem:[%s4593_s2 + $0x1a0] sm:$0xff]  ;;  %v1630_v28 = vld [vmem:[%s4593_s2 + $0x1a8] sm:$0xff]  ;;  %v1599_v35 = vld [vmem:[%s4593_s2 + $0xb0] sm:$0xff] }
   0x8   :  { %2728 = vmatprep.subr.bf16.mxu1 %v2727_v17  ;;  %v1581_v29 = vld [vmem:[%s4593_s2 + $0x20] sm:$0xff]  ;;  %v2731_v30 = vpack.c.bf16 %v1630_v28, %v1629_v27  ;;  %v1582_v31 = vld [vmem:[%s4593_s2 + $0x28] sm:$0xff]  ;;  %v1600_v36 = vld [vmem:[%s4593_s2 + $0xb8] sm:$0xff] }
   0x9   :  { %v1613_v32 = vld [vmem:[%s4593_s2 + $0x120] sm:$0xff]  ;;  %v1614_v33 = vld [vmem:[%s4593_s2 + $0x128] sm:$0xff]  ;;  %v2701_v34 = vpack.c.bf16 %v1582_v31, %v1581_v29  ;;  %v1631_v37 = vld [vmem:[%s4593_s2 + $0x1b0] sm:$0xff]  ;;  %v2703_v39 = vpack.c.bf16 %v1600_v36, %v1599_v35 }
   0xa   :  { %2698 = vmatpush3.bf16.msra.mxu0 %v2697_v21  ;;  %v2733_v38 = vpack.c.bf16 %v1614_v33, %v1613_v32  ;;  %v1632_v40 = vld [vmem:[%s4593_s2 + $0x1b8] sm:$0xff]  ;;  %v1583_v41 = vld [vmem:[%s4593_s2 + $0x30] sm:$0xff]  ;;  %v1601_v46 = vld [vmem:[%s4593_s2 + $0xc0] sm:$0xff] }
   0xb   :  { %2730 = vmatpush3.bf16.msra.mxu1 %v2729_v25  ;;  %2700 = vmatprep.subr.bf16.mxu0 %v2699_v26  ;;  %v1584_v42 = vld [vmem:[%s4593_s2 + $0x38] sm:$0xff]  ;;  %v2735_v43 = vpack.c.bf16 %v1632_v40, %v1631_v37  ;;  %v1615_v44 = vld [vmem:[%s4593_s2 + $0x130] sm:$0xff]  ;;  %v1602_v47 = vld [vmem:[%s4593_s2 + $0xc8] sm:$0xff] }
   0xc   :  { %2732 = vmatprep.subr.bf16.mxu1 %v2731_v30  ;;  %v1616_v45 = vld [vmem:[%s4593_s2 + $0x138] sm:$0xff]  ;;  %v1633_v48 = vld [vmem:[%s4593_s2 + $0x1c0] sm:$0xff]  ;;  %v1634_v49 = vld [vmem:[%s4593_s2 + $0x1c8] sm:$0xff]  ;;  %v2705_v50 = vpack.c.bf16 %v1584_v42, %v1583_v41  ;;  %v2707_v52 = vpack.c.bf16 %v1602_v47, %v1601_v46 }
   0xd   :  { %v2737_v51 = vpack.c.bf16 %v1616_v45, %v1615_v44  ;;  %v1585_v53 = vld [vmem:[%s4593_s2 + $0x40] sm:$0xff]  ;;  %v1586_v54 = vld [vmem:[%s4593_s2 + $0x48] sm:$0xff]  ;;  %v2739_v56 = vpack.c.bf16 %v1634_v49, %v1633_v48  ;;  %v1603_v58 = vld [vmem:[%s4593_s2 + $0xd0] sm:$0xff] }
   0xe   :  { %2702 = vmatpush3.bf16.msra.mxu0 %v2701_v34  ;;  %v1617_v55 = vld [vmem:[%s4593_s2 + $0x140] sm:$0xff]  ;;  %v1618_v57 = vld [vmem:[%s4593_s2 + $0x148] sm:$0xff]  ;;  %v1604_v59 = vld [vmem:[%s4593_s2 + $0xd8] sm:$0xff]  ;;  %v2709_v62 = vpack.c.bf16 %v1586_v54, %v1585_v53 }
   0xf   :  { %2734 = vmatpush3.bf16.msra.mxu1 %v2733_v38  ;;  %2704 = vmatprep.subr.bf16.mxu0 %v2703_v39  ;;  %v1635_v60 = vld [vmem:[%s4593_s2 + $0x1d0] sm:$0xff]  ;;  %v1636_v61 = vld [vmem:[%s4593_s2 + $0x1d8] sm:$0xff]  ;;  %v2741_v63 = vpack.c.bf16 %v1618_v57, %v1617_v55  ;;  %v2711_v0 = vpack.c.bf16 %v1604_v59, %v1603_v58  ;;  %v1605_v6 = vld [vmem:[%s4593_s2 + $0xe0] sm:$0xff] }
  0x10   :  { %2736 = vmatprep.subr.bf16.mxu1 %v2735_v43  ;;  %v1587_v1 = vld [vmem:[%s4593_s2 + $0x50] sm:$0xff]  ;;  %v1588_v2 = vld [vmem:[%s4593_s2 + $0x58] sm:$0xff]  ;;  %v2743_v4 = vpack.c.bf16 %v1636_v61, %v1635_v60  ;;  %v1606_v7 = vld [vmem:[%s4593_s2 + $0xe8] sm:$0xff] }
  0x11   :  { %v1619_v3 = vld [vmem:[%s4593_s2 + $0x150] sm:$0xff]  ;;  %v1620_v5 = vld [vmem:[%s4593_s2 + $0x158] sm:$0xff]  ;;  %v1637_v8 = vld [vmem:[%s4593_s2 + $0x1e0] sm:$0xff]  ;;  %v2713_v11 = vpack.c.bf16 %v1588_v2, %v1587_v1  ;;  %v2715_v16 = vpack.c.bf16 %v1606_v7, %v1605_v6  ;;  %v4620_v1 = vmov 683565275   ;;  %v4600_v7 = vmov 0.0|0.0  }
  0x12   :  { %2706 = vmatpush3.bf16.msra.mxu0 %v2705_v50  ;;  %v1638_v9 = vld [vmem:[%s4593_s2 + $0x1e8] sm:$0xff]  ;;  %v1589_v10 = vld [vmem:[%s4593_s2 + $0x60] sm:$0xff]  ;;  %v2745_v15 = vpack.c.bf16 %v1620_v5, %v1619_v3  ;;  %v1607_v17 = vld [vmem:[%s4593_s2 + $0xf0] sm:$0xff]  ;;  %v4610_v3 = vmov 2475754826  }
  0x13   :  { %2738 = vmatpush3.bf16.msra.mxu1 %v2737_v51  ;;  %2708 = vmatprep.subr.bf16.mxu0 %v2707_v52  ;;  %v1590_v12 = vld [vmem:[%s4593_s2 + $0x68] sm:$0xff]  ;;  %v1621_v13 = vld [vmem:[%s4593_s2 + $0x160] sm:$0xff]  ;;  %v3201_v19 = vld [vmem:[%s4594_s0 + $0x18] sm:$0xff]  ;;  %v2747_v20 = vpack.c.bf16 %v1638_v9, %v1637_v8  ;;  %v4612_v5 = vmov 2131351028  }
  0x14   :  { %2740 = vmatprep.subr.bf16.mxu1 %v2739_v56  ;;  %v1622_v14 = vld [vmem:[%s4593_s2 + $0x168] sm:$0xff]  ;;  %4622 = vst [vmem:[#allocation2_spill] sm:$0xff] %v3201_v19  ;;  %v1608_v21 = vld [vmem:[%s4593_s2 + $0xf8] sm:$0xff]  ;;  %v1639_v22 = vld [vmem:[%s4593_s2 + $0x1f0] sm:$0xff]  ;;  %v339_v29 = vand.u32 2147483647, %v3201_v19  ;;  %v2717_v31 = vpack.c.bf16 %v1590_v12, %v1589_v10 }
  0x15   :  { %v3196_v18 = vld [vmem:[%s4594_s0 + $0x8] sm:$0xff]  ;;  %v1640_v23 = vld [vmem:[%s4593_s2 + $0x1f8] sm:$0xff]  ;;  %v1591_v26 = vld [vmem:[%s4593_s2 + $0x70] sm:$0xff]  ;;  %v342_v30 = vand.u32 2139095040, %v3201_v19  ;;  %v2749_v32 = vpack.c.bf16 %v1622_v14, %v1621_v13  ;;  %v2719_v37 = vpack.c.bf16 %v1608_v21, %v1607_v17  ;;  %v4615_v8 = vmov 2102212464  }
  0x16   :  { %2710 = vmatpush3.bf16.msra.mxu0 %v2709_v62  ;;  %v133_v24 = vand.u32 2147483647, %v3196_v18  ;;  %v136_v25 = vand.u32 2139095040, %v3196_v18  ;;  %v1592_v27 = vld [vmem:[%s4593_s2 + $0x78] sm:$0xff]  ;;  %v1623_v28 = vld [vmem:[%s4593_s2 + $0x170] sm:$0xff]  ;;  %v1657_v35 = vld [vmem:[%s4593_s2 + $0x280] sm:$0xff]  ;;  %v2751_v42 = vpack.c.bf16 %v1640_v23, %v1639_v22 }
  0x17   :  { %2742 = vmatpush3.bf16.msra.mxu1 %v2741_v63  ;;  %2712 = vmatprep.subr.bf16.mxu0 %v2711_v0  ;;  %v1624_v33 = vld [vmem:[%s4593_s2 + $0x178] sm:$0xff]  ;;  %v3234_v36 = vld [vmem:[%s4594_s0] sm:$0xff]  ;;  %v343_v39 = vshrl.u32 %v342_v30, 23  ;;  %v346_v40 = vand.u32 8388607, %v339_v29  ;;  %v1658_v41 = vld [vmem:[%s4593_s2 + $0x288] sm:$0xff]  ;;  %v2721_v46 = vpack.c.bf16 %v1592_v27, %v1591_v26 }
  0x18   :  { %2744 = vmatprep.subr.bf16.mxu1 %v2743_v4  ;;  %v137_v34 = vshrl.u32 %v136_v25, 23  ;;  %v140_v38 = vand.u32 8388607, %v133_v24  ;;  %v33_v45 = vand.u32 2139095040, %v3234_v36  ;;  %v2753_v47 = vpack.c.bf16 %v1624_v33, %v1623_v28 }
  0x19   :  { %v2361_v44 = vadd.s32 4294967169, %v343_v39  ;;  %v2755_v49 = vpack.c.bf16 %v1658_v41, %v1657_v35  ;;  %v347_v51 = vor.u32 8388608, %v346_v40  ;;  %v30_v59 = vand.u32 2147483647, %v3234_v36 }
  0x1a   :  { %2714 = vmatpush3.bf16.msra.mxu0 %v2713_v11  ;;  %v2353_v43 = vadd.s32 4294967169, %v137_v34  ;;  %v141_v50 = vor.u32 8388608, %v140_v38  ;;  %v34_v53 = vshrl.u32 %v33_v45, 23  ;;  %v4618_v10 = vmov 920167782  }
  0x1b   :  { %2746 = vmatpush3.bf16.msra.mxu1 %v2745_v15  ;;  %2716 = vmatprep.subr.bf16.mxu0 %v2715_v16  ;;  %v349_v52 = vadd.s32 1, %v2361_v44  ;;  %v3249_v63 = vshll.u32 %v347_v51, 8  ;;  %vm135_vm13 = vcmp.lt.s32.totalorder %v3196_v18, 0  ;;  %vm3351_vm14 = vcmp.le.f32.partialorder %v133_v24, 0.7853982 }
  0x1c   :  { %2748 = vmatprep.subr.bf16.mxu1 %v2747_v20  ;;  %v143_v48 = vadd.s32 1, %v2353_v43  ;;  %v2349_v55 = vadd.s32 4294967169, %v34_v53  ;;  %v3245_v60 = vshll.u32 %v141_v50, 8  ;;  %v2984_v20 = vmov 1326507024  }
  0x1d   :  { %vm350_vm1 = vcmp.gt.s32.totalorder %v349_v52, 0 }
  0x1e   :  { %2718 = vmatpush3.bf16.msra.mxu0 %v2717_v31  ;;  %vm144_vm0 = vcmp.gt.s32.totalorder %v143_v48, 0  ;;  %v351_v58 = vsel %vm350_vm1, %v349_v52, 0  ;;  %v3257_v12 = vadd.s32 1, %v2349_v55 }
  0x1f   :  { %2750 = vmatpush3.bf16.msra.mxu1 %v2749_v32  ;;  %2720 = vmatprep.subr.bf16.mxu0 %v2719_v37  ;;  %v145_v54 = vsel %vm144_vm0, %v143_v48, 0  ;;  %v3247_v61 = vshrl.u32 %v351_v58, 5  ;;  %v353_v62 = vand.u32 31, %v351_v58 }
  0x20   :  { %2752 = vmatprep.subr.bf16.mxu1 %v2751_v42  ;;  %v146_v56 = vshrl.u32 %v145_v54, 5  ;;  %v147_v57 = vand.u32 31, %v145_v54  ;;  %vm41_vm11 = vcmp.gt.s32.totalorder %v3257_v12, 0 }
  0x21   :  { %v354_v26 = vsub.s32 32, %v353_v62  ;;  %v356_v30 = vshll.u32 %v4620_v1, %v353_v62  ;;  %v359_v39 = vshll.u32 %v4610_v3, %v353_v62  ;;  %v362_v54 = vshll.u32 %v4612_v5, %v353_v62 }
  0x22   :  { %2722 = vmatpush3.bf16.msra.mxu0 %v2721_v46  ;;  %v148_v0 = vsub.s32 32, %v147_v57  ;;  %v150_v2 = vshll.u32 %v4620_v1, %v147_v57  ;;  %v153_v4 = vshll.u32 %v4610_v3, %v147_v57  ;;  %v156_v6 = vshll.u32 %v4612_v5, %v147_v57 }
  0x23   :  { %2754 = vmatpush3.bf16.msra.mxu1 %v2753_v47  ;;  %2756 = vmatprep.subr.bf16.mxu0 %v2755_v49  ;;  %v159_v9 = vshll.u32 %v4615_v8, %v147_v57  ;;  %v162_v11 = vshll.u32 %v4618_v10, %v147_v57  ;;  %vm165_vm2 = vcmp.lt.s32.totalorder %v146_v56, 1  ;;  %vm166_vm3 = vcmp.lt.s32.totalorder %v146_v56, 2 }
  0x24   :  { %2787 = vmatprep.subr.bf16.mxu1 %v4600_v7  ;;  %v149_v13 = vshrl.u32 %v4620_v1, %v148_v0  ;;  %v151_v14 = vshrl.u32 %v4610_v3, %v148_v0  ;;  %v154_v15 = vshrl.u32 %v4612_v5, %v148_v0  ;;  %v157_v16 = vshrl.u32 %v4615_v8, %v148_v0 }
  0x25   :  { %v160_v17 = vshrl.u32 %v4618_v10, %v148_v0  ;;  %v163_v21 = vshrl.u32 %v2984_v20, %v148_v0  ;;  %vm168_vm4 = vcmp.lt.s32.totalorder %v146_v56, 4  ;;  %vm167_vm5 = vcmp.lt.s32.totalorder %v146_v56, 3 }
  0x26   :  { %v152_v22 = vor.u32 %v151_v14, %v150_v2  ;;  %v155_v23 = vor.u32 %v154_v15, %v153_v4  ;;  %v158_v25 = vor.u32 %v157_v16, %v156_v6  ;;  %v355_v42 = vshrl.u32 %v4620_v1, %v354_v26 }
  0x27   :  { %v161_v27 = vor.u32 %v160_v17, %v159_v9  ;;  %v164_v28 = vor.u32 %v163_v21, %v162_v11  ;;  %v357_v43 = vshrl.u32 %v4610_v3, %v354_v26  ;;  %v360_v47 = vshrl.u32 %v4612_v5, %v354_v26 }
  0x28   :  { %v169_v31 = vsel %vm165_vm2, %v149_v13, %v152_v22  ;;  %v170_v32 = vsel %vm168_vm4, %v158_v25, 2102212464  ;;  %v173_v33 = vsel %vm165_vm2, %v152_v22, %v155_v23  ;;  %v177_v34 = vsel %vm165_vm2, %v155_v23, %v158_v25 }
  0x29   :  { %v171_v35 = vsel %vm167_vm5, %v155_v23, %v170_v32  ;;  %v174_v37 = vsel %vm168_vm4, %v161_v27, 920167782  ;;  %v178_v38 = vsel %vm168_vm4, %v164_v28, 1326507024  ;;  %v358_v52 = vor.u32 %v357_v43, %v356_v30 }
  0x2a   :  { %v175_v40 = vsel %vm167_vm5, %v158_v25, %v174_v37  ;;  %v179_v41 = vsel %vm167_vm5, %v161_v27, %v178_v38  ;;  %v172_v44 = vsel %vm166_vm3, %v169_v31, %v171_v35  ;;  %v361_v53 = vor.u32 %v360_v47, %v359_v39 }
  0x2b   :  { %v176_v45 = vsel %vm166_vm3, %v173_v33, %v175_v40  ;;  %v180_v46 = vsel %vm166_vm3, %v177_v34, %v179_v41  ;;  %v363_v55 = vshrl.u32 %v4615_v8, %v354_v26  ;;  %v365_v56 = vshll.u32 %v4615_v8, %v353_v62 }
  0x2c   :  { %v3277_v48 = vmul.u32.u64.low %v3245_v60, %v180_v46  ;;  %v3278_v49 = vmul.u32.u64.high %v3245_v60, %v180_v46, %v3277_v48  ;;  %v3281_v50 = vmul.u32.u64.low %v3245_v60, %v176_v45  ;;  %v3282_v51 = vmul.u32.u64.high %v3245_v60, %v176_v45, %v3281_v50 }
  0x2d   :  { %v366_v57 = vshrl.u32 %v4618_v10, %v354_v26  ;;  %v368_v58 = vshll.u32 %v4618_v10, %v353_v62  ;;  %v369_v0 = vshrl.u32 %v2984_v20, %v354_v26  ;;  %v188_v2 = vmul.u32 %v3245_v60, %v172_v44 }
  0x2e   :  { %v364_v4 = vor.u32 %v363_v55, %v362_v54  ;;  %vm371_vm6 = vcmp.lt.s32.totalorder %v3247_v61, 1  ;;  %vm372_vm7 = vcmp.lt.s32.totalorder %v3247_v61, 2  ;;  %vm190_vm8 = vc.u32 %v3278_v49, %v3281_v50 }
  0x2f   :  { %v191_v6 = vadd.s32 1, %v3282_v51  ;;  %v367_v9 = vor.u32 %v366_v57, %v365_v56  ;;  %vm373_vm9 = vcmp.lt.s32.totalorder %v3247_v61, 3  ;;  %v370_v11 = vor.u32 %v369_v0, %v368_v58 }
  0x30   :  { %vm374_vm10 = vcmp.lt.s32.totalorder %v3247_v61, 4  ;;  %v375_v62 = vsel %vm371_vm6, %v355_v42, %v358_v52  ;;  %v379_v13 = vsel %vm371_vm6, %v358_v52, %v361_v53  ;;  %v383_v16 = vsel %vm371_vm6, %v361_v53, %v364_v4  ;;  %v3324_v42 = vld [vmem:[%s4594_s0 + $0x10] sm:$0xff] }
  0x31   :  { %v192_v60 = vsel %vm190_vm8, %v191_v6, %v3282_v51  ;;  %v376_v14 = vsel %vm374_vm10, %v364_v4, 2102212464  ;;  %v380_v15 = vsel %vm374_vm10, %v367_v9, 920167782  ;;  %v384_v23 = vsel %vm374_vm10, %v370_v11, 1326507024 }
  0x32   :  { %v193_v17 = vadd.s32 %v192_v60, %v188_v2  ;;  %v377_v21 = vsel %vm373_vm9, %v361_v53, %v376_v14  ;;  %v381_v22 = vsel %vm373_vm9, %v364_v4, %v380_v15  ;;  %v385_v27 = vsel %vm373_vm9, %v367_v9, %v384_v23 }
  0x33   :  { %v378_v25 = vsel %vm372_vm7, %v375_v62, %v377_v21  ;;  %v382_v26 = vsel %vm372_vm7, %v379_v13, %v381_v22  ;;  %v386_v30 = vsel %vm372_vm7, %v383_v16, %v385_v27  ;;  %v42_v35 = vsel %vm41_vm11, %v3257_v12, 0 }
  0x34   :  { %v194_v28 = vadd.s32 536870912, %v193_v17  ;;  %v3308_v31 = vmul.u32.u64.low %v3249_v63, %v382_v26  ;;  %v3309_v32 = vmul.u32.u64.high %v3249_v63, %v382_v26, %v3308_v31  ;;  %v44_v38 = vand.u32 31, %v42_v35 }
  0x35   :  { %v3313_v33 = vmul.u32.u64.low %v3249_v63, %v386_v30  ;;  %v3314_v34 = vmul.u32.u64.high %v3249_v63, %v386_v30, %v3313_v33  ;;  %v394_v39 = vmul.u32 %v3249_v63, %v378_v25  ;;  %v37_v40 = vand.u32 8388607, %v30_v59 }
  0x36   :  { %v195_v37 = vshrl.u32 %v194_v28, 30  ;;  %v397_v41 = vadd.s32 1, %v3309_v32  ;;  %v45_v43 = vsub.s32 32, %v44_v38  ;;  %v239_v46 = vand.u32 2139095040, %v3324_v42 }
  0x37   :  { %vm396_vm12 = vc.u32 %v3314_v34, %v3308_v31  ;;  %v38_v45 = vor.u32 8388608, %v37_v40  ;;  %v3334_v48 = vshrl.u32 %v42_v35, 5  ;;  %v47_v51 = vshll.u32 %v4620_v1, %v44_v38 }
  0x38   :  { %v196_v61 = vshll.u32 %v195_v37, 30  ;;  %v398_v44 = vsel %vm396_vm12, %v397_v41, %v3309_v32  ;;  %v50_v52 = vshll.u32 %v4610_v3, %v44_v38  ;;  %v48_v54 = vshrl.u32 %v4610_v3, %v45_v43 }
  0x39   :  { %v399_v63 = vadd.s32 %v398_v44, %v394_v39  ;;  %v51_v55 = vshrl.u32 %v4612_v5, %v45_v43  ;;  %v53_v56 = vshll.u32 %v4612_v5, %v44_v38  ;;  %v54_v58 = vshrl.u32 %v4615_v8, %v45_v43 }
  0x3a   :  { %v3328_v12 = vsub.s32 %v193_v17, %v196_v61  ;;  %v56_v0 = vshll.u32 %v4615_v8, %v44_v38  ;;  %v57_v2 = vshrl.u32 %v4618_v10, %v45_v43  ;;  %v219_v4 = vsub.s32 4, %v195_v37 }
  0x3b   :  { %v400_v53 = vadd.s32 536870912, %v399_v63  ;;  %v59_v9 = vshll.u32 %v4618_v10, %v44_v38  ;;  %v60_v11 = vshrl.u32 %v2984_v20, %v45_v43  ;;  %v189_v13 = vadd.s32 %v3281_v50, %v3278_v49 }
  0x3c   :  { %v199_v47 = vsub.s32 0, %v3328_v12  ;;  %v3357_v14 = vshll.u32 %v38_v45, 8  ;;  %v240_v15 = vshrl.u32 %v239_v46, 23  ;;  %v46_v17 = vshrl.u32 %v4620_v1, %v45_v43 }
  0x3d   :  { %v3345_v6 = vshrl.u32 %v400_v53, 30  ;;  %v49_v21 = vor.u32 %v48_v54, %v47_v51  ;;  %v52_v22 = vor.u32 %v51_v55, %v50_v52  ;;  %v55_v25 = vor.u32 %v54_v58, %v53_v56 }
  0x3e   :  { %v2354_v57 = vmin.u32 %v199_v47, %v3328_v12  ;;  %v58_v26 = vor.u32 %v57_v2, %v56_v0  ;;  %vm62_vm15 = vcmp.lt.s32.totalorder %v3334_v48, 1  ;;  %v220_v24 = vsel %vm135_vm13, %v219_v4, %v195_v37 }
  0x3f   :  { %v402_v16 = vshll.u32 %v3345_v6, 30  ;;  %v61_v49 = vor.u32 %v60_v11, %v59_v9  ;;  %vm65_vm0 = vcmp.lt.s32.totalorder %v3334_v48, 4  ;;  %vm63_vm2 = vcmp.lt.s32.totalorder %v3334_v48, 2 }
  0x40   :  { %v201_v60 = vclz %v2354_v57  ;;  %vm64_vm3 = vcmp.lt.s32.totalorder %v3334_v48, 3  ;;  %v67_v50 = vsel %vm65_vm0, %v55_v25, 2102212464  ;;  %v66_v32 = vsel %vm62_vm15, %v46_v17, %v49_v21 }
  0x41   :  { %v3364_v27 = vsub.s32 %v399_v63, %v402_v16  ;;  %v70_v33 = vsel %vm62_vm15, %v49_v21, %v52_v22  ;;  %v71_v39 = vsel %vm65_vm0, %v58_v26, 920167782  ;;  %vm341_vm4 = vcmp.lt.s32.totalorder %v3201_v19, 0 }
  0x42   :  { %v2355_v23 = vadd.s32 4294967294, %v201_v60  ;;  %v68_v61 = vsel %vm64_vm3, %v52_v22, %v67_v50  ;;  %v72_v41 = vsel %vm64_vm3, %v55_v25, %v71_v39  ;;  %v74_v43 = vsel %vm62_vm15, %v52_v22, %v55_v25 }
  0x43   :  { %v405_v30 = vsub.s32 0, %v3364_v27  ;;  %v75_v45 = vsel %vm65_vm0, %v61_v49, 1326507024  ;;  %v3393_v46 = vsel %vm3351_vm14, 0, %v220_v24  ;;  %v425_v51 = vsub.s32 4, %v3345_v6 }
  0x44   :  { %vm2356_vm1 = vcmp.lt.s32.totalorder %v2355_v23, 0  ;;  %v2357_v52 = vadd.s32 4294967169, %v240_v15  ;;  %v69_v55 = vsel %vm63_vm2, %v66_v32, %v68_v61  ;;  %v76_v56 = vsel %vm64_vm3, %v58_v26, %v75_v45 }
  0x45   :  { %v204_v28 = vsel %vm2356_vm1, 0, %v2355_v23  ;;  %v2362_v40 = vmin.u32 %v405_v30, %v3364_v27  ;;  %v77_v58 = vsel %vm63_vm2, %v74_v43, %v76_v56  ;;  %v395_v60 = vadd.s32 %v3308_v31, %v3314_v34 }
  0x46   :  { %v205_v35 = vsub.s32 32, %v204_v28  ;;  %v206_v37 = vshll.u32 %v3328_v12, %v204_v28  ;;  %v209_v38 = vsub.s32 4294967266, %v204_v28  ;;  %v73_v12 = vsel %vm63_vm2, %v70_v33, %v72_v41 }
  0x47   :  { %v407_v47 = vclz %v2362_v40  ;;  %v3403_v0 = vmul.u32.u64.low %v3357_v14, %v73_v12  ;;  %v3404_v2 = vmul.u32.u64.high %v3357_v14, %v73_v12, %v3403_v0  ;;  %v236_v15 = vand.u32 2147483647, %v3324_v42 }
  0x48   :  { %v207_v44 = vshrl.u32 %v189_v13, %v205_v35  ;;  %v210_v63 = vadd.s32 127, %v209_v38  ;;  %v3408_v11 = vmul.u32.u64.low %v3357_v14, %v77_v58  ;;  %v3409_v13 = vmul.u32.u64.high %v3357_v14, %v77_v58, %v3408_v11 }
  0x49   :  { %v2363_v57 = vadd.s32 4294967294, %v407_v47  ;;  %v246_v16 = vadd.s32 1, %v2357_v52  ;;  %v1046_v17 = vadd.s32 3, %v3393_v46  ;;  %v85_v22 = vmul.u32 %v3357_v14, %v69_v55 }
  0x4a   :  { %v208_v53 = vor.u32 %v207_v44, %v206_v37  ;;  %v211_v54 = vshll.u32 %v210_v63, 23  ;;  %v88_v24 = vadd.s32 1, %v3404_v2  ;;  %v426_v31 = vsel %vm341_vm4, %v425_v51, %v3345_v6 }
  0x4b   :  { %vm2364_vm5 = vcmp.lt.s32.totalorder %v2363_v57, 0  ;;  %vm87_vm6 = vc.u32 %v3409_v13, %v3403_v0  ;;  %vm247_vm7 = vcmp.gt.s32.totalorder %v246_v16, 0  ;;  %vm3426_vm8 = vcmp.le.f32.partialorder %v339_v29, 0.7853982 }
  0x4c   :  { %v212_v4 = vor.u32 4788187, %v211_v54  ;;  %v215_v9 = vcvt.s32.f32 %v208_v53  ;;  %v410_v21 = vsel %vm2364_vm5, 0, %v2363_v57  ;;  %v89_v28 = vsel %vm87_vm6, %v88_v24, %v3404_v2 }
  0x4d   :  { %v411_v23 = vsub.s32 32, %v410_v21  ;;  %v412_v25 = vshll.u32 %v3364_v27, %v410_v21  ;;  %v415_v26 = vsub.s32 4294967266, %v410_v21  ;;  %v248_v14 = vsel %vm247_vm7, %v246_v16, 0 }
  0x4e   :  { %v213_v48 = vand.u32 2147483647, %v212_v4  ;;  %v90_v32 = vadd.s32 %v89_v28, %v85_v22  ;;  %v250_v33 = vand.u32 31, %v248_v14  ;;  %v3432_v37 = vsel %vm3426_vm8, 0, %v426_v31 }
  0x4f   :  { %v413_v34 = vshrl.u32 %v395_v60, %v411_v23  ;;  %v416_v50 = vadd.s32 127, %v415_v26  ;;  %v243_v40 = vand.u32 8388607, %v236_v15  ;;  %v3441_v41 = vand.u32 3, %v1046_v17 }
  0x50   :  { %v216_v49 = vmul.f32 %v215_v9, %v213_v48  ;;  %v91_v39 = vadd.s32 536870912, %v90_v32  ;;  %v251_v61 = vsub.s32 32, %v250_v33  ;;  %v1254_v63 = vadd.s32 3, %v3432_v37 }
  0x51   :  { %v414_v35 = vor.u32 %v413_v34, %v412_v25  ;;  %v417_v6 = vshll.u32 %v416_v50, 23  ;;  %v3446_v45 = vshrl.u32 %v248_v14, 5  ;;  %v253_v51 = vshll.u32 %v4620_v1, %v250_v33 }
  0x52   :  { %v217_v30 = vxor.u32 2147483648, %v216_v49  ;;  %v3444_v12 = vshrl.u32 %v91_v39, 30  ;;  %v256_v52 = vshll.u32 %v4610_v3, %v250_v33  ;;  %v254_v53 = vshrl.u32 %v4610_v3, %v251_v61 }
  0x53   :  { %v418_v43 = vor.u32 4788187, %v417_v6  ;;  %v421_v44 = vcvt.s32.f32 %v414_v35  ;;  %v257_v54 = vshrl.u32 %v4612_v5, %v251_v61  ;;  %v259_v55 = vshll.u32 %v4612_v5, %v250_v33 }
  0x54   :  { %v218_v38 = vsel %vm135_vm13, %v217_v30, %v216_v49  ;;  %v93_v62 = vshll.u32 %v3444_v12, 30  ;;  %v260_v57 = vshrl.u32 %v4615_v8, %v251_v61  ;;  %v262_v58 = vshll.u32 %v4615_v8, %v250_v33 }
  0x55   :  { %v221_v29 = vsel %vm3351_vm14, %v3196_v18, %v218_v38  ;;  %v419_v47 = vand.u32 2147483647, %v418_v43  ;;  %v263_v2 = vshrl.u32 %v4618_v10, %v251_v61  ;;  %vm1048_vm9 = vcmp.lt.s32.totalorder %v3441_v41, 2 }
  0x56   :  { %2950 = vcosq.f32 %v221_v29  ;;  %vm1049_vm10 = vcmp.eq.s32.totalorder %v3441_v41, 0  ;;  %vm1052_vm11 = vcmp.eq.s32.totalorder %v3441_v41, 2  ;;  %v3460_v4 = vand.u32 3, %v1254_v63 }
  0x57   :  { %2952 = vsinq.f32 %v221_v29  ;;  %v422_v56 = vmul.f32 %v421_v44, %v419_v47  ;;  %v3462_v9 = vsub.s32 %v90_v32, %v93_v62  ;;  %vm225_vm12 = vweird.f32 %v3196_v18 }
  0x58   :  { %v264_v60 = vor.u32 %v263_v2, %v262_v58  ;;  %v265_v16 = vshll.u32 %v4618_v10, %v250_v33  ;;  %v266_v48 = vshrl.u32 %v2984_v20, %v251_v61  ;;  %v244_v21 = vor.u32 8388608, %v243_v40  ;;  %v3531_v2 = vld [vmem:[%s4594_s0 + $0x30] sm:$0xff] }
  0x59   :  { %v423_v11 = vxor.u32 2147483648, %v422_v56  ;;  %v96_v17 = vsub.s32 0, %v3462_v9  ;;  %v252_v22 = vshrl.u32 %v4620_v1, %v251_v61  ;;  %v255_v23 = vor.u32 %v254_v53, %v253_v51 }
  0x5a   :  { %v258_v26 = vor.u32 %v257_v54, %v256_v52  ;;  %v261_v24 = vor.u32 %v260_v57, %v259_v55  ;;  %vm271_vm13 = vcmp.lt.s32.totalorder %v3446_v45, 4  ;;  %vm268_vm14 = vcmp.lt.s32.totalorder %v3446_v45, 1 }
  0x5b   :  { %v424_v25 = vsel %vm341_vm4, %v423_v11, %v422_v56  ;;  %v2350_v31 = vmin.u32 %v96_v17, %v3462_v9  ;;  %vm270_vm15 = vcmp.lt.s32.totalorder %v3446_v45, 3  ;;  %v267_v34 = vor.u32 %v266_v48, %v265_v16 }
  0x5c   :  { %v427_v49 = vsel %vm3426_vm8, %v3201_v19, %v424_v25  ;;  %v273_v50 = vsel %vm271_vm13, %v261_v24, 2102212464  ;;  %v277_v28 = vsel %vm271_vm13, %v264_v60, 920167782  ;;  %v86_v30 = vadd.s32 %v3403_v0, %v3409_v13 }
  0x5d   :  { %2954 = vcosq.f32 %v427_v49  ;;  %v98_v27 = vclz %v2350_v31  ;;  %v284_v32 = vshll.u32 %v244_v21, 8  ;;  %vm269_vm0 = vcmp.lt.s32.totalorder %v3446_v45, 2 }
  0x5e   :  { %2956 = vsinq.f32 %v427_v49  ;;  %v276_v6 = vsel %vm268_vm14, %v255_v23, %v258_v26  ;;  %v278_v38 = vsel %vm270_vm15, %v261_v24, %v277_v28  ;;  %v272_v0 = vsel %vm268_vm14, %v252_v22, %v255_v23 }
  0x5f   :  { %v2351_v40 = vadd.s32 4294967294, %v98_v27  ;;  %v274_v13 = vsel %vm270_vm15, %v258_v26, %v273_v50  ;;  %v116_v29 = vsub.s32 4, %v3444_v12  ;;  %v280_v43 = vsel %vm268_vm14, %v258_v26, %v261_v24 }
  0x60   :  { %v3482_v14 = vpop.eup %2950  ;;  %v281_v44 = vsel %vm271_vm13, %v267_v34, 1326507024  ;;  %vm431_vm1 = vweird.f32 %v3201_v19  ;;  %v279_v47 = vsel %vm269_vm0, %v276_v6, %v278_v38  ;;  %v275_v53 = vsel %vm269_vm0, %v272_v0, %v274_v13 }
  0x61   :  { %v3486_v33 = vpop.eup %2952  ;;  %v4608_v35 = vxor.u32 2147483648, %v3482_v14  ;;  %vm2352_vm2 = vcmp.lt.s32.totalorder %v2351_v40, 0  ;;  %v282_v51 = vsel %vm270_vm15, %v264_v60, %v281_v44  ;;  %vm3542_vm3 = vcmp.le.f32.partialorder %v30_v59, 0.7853982 }
  0x62   :  { %v4609_v39 = vxor.u32 2147483648, %v3486_v33  ;;  %v101_v62 = vsel %vm2352_vm2, 0, %v2351_v40  ;;  %v283_v54 = vsel %vm269_vm0, %v280_v43, %v282_v51  ;;  %vm32_vm4 = vcmp.lt.s32.totalorder %v3234_v36, 0 }
  0x63   :  { %v1054_v61 = vsel %vm1052_vm11, %v4608_v35, %v3486_v33  ;;  %v102_v56 = vsub.s32 32, %v101_v62  ;;  %v103_v57 = vshll.u32 %v3462_v9, %v101_v62  ;;  %v106_v58 = vsub.s32 4294967266, %v101_v62 }
  0x64   :  { %v1051_v63 = vsel %vm1049_vm10, %v3482_v14, %v4609_v39  ;;  %v3533_v41 = vmul.u32.u64.low %v284_v32, %v283_v54  ;;  %v3534_v11 = vmul.u32.u64.high %v284_v32, %v283_v54, %v3533_v41  ;;  %vm1257_vm5 = vcmp.eq.s32.totalorder %v3460_v4, 0 }
  0x65   :  { %v1055_v52 = vsel %vm1048_vm9, %v1051_v63, %v1054_v61  ;;  %v3536_v60 = vmul.u32.u64.low %v284_v32, %v279_v47  ;;  %v3537_v16 = vmul.u32.u64.high %v284_v32, %v279_v47, %v3536_v60  ;;  %v104_v9 = vshrl.u32 %v86_v30, %v102_v56  ;;  %v3598_v56 = vld [vmem:[%s4593_s2 + $0x208] sm:$0xff] }
  0x66   :  { %v1056_v55 = vsel %vm225_vm12, nan, %v1055_v52  ;;  %v107_v48 = vadd.s32 127, %v106_v58  ;;  %vm1260_vm6 = vcmp.eq.s32.totalorder %v3460_v4, 2  ;;  %v117_v21 = vsel %vm32_vm4, %v116_v29, %v3444_v12 }
  0x67   :  { %1743 = vmatprep.mubr.f32.mxu0 %v1056_v55  ;;  %v3547_v17 = vpop.eup %2954  ;;  %v651_v22 = vand.u32 2139095040, %v3531_v2  ;;  %v105_v25 = vor.u32 %v104_v9, %v103_v57  ;;  %v291_v24 = vmul.u32 %v284_v32, %v275_v53  ;;  %vm1256_vm7 = vcmp.lt.s32.totalorder %v3460_v4, 2  ;;  %v3593_v55 = vld [vmem:[%s4593_s2 + $0x200] sm:$0xff] }
  0x68   :  { %v3555_v59 = vpop.eup %2956  ;;  %v4602_v23 = vxor.u32 2147483648, %v3547_v17  ;;  %v108_v26 = vshll.u32 %v107_v48, 23  ;;  %vm293_vm8 = vc.u32 %v3534_v11, %v3536_v60  ;;  %v294_v31 = vadd.s32 1, %v3537_v16 }
  0x69   :  { %v4603_v49 = vxor.u32 2147483648, %v3555_v59  ;;  %v112_v50 = vcvt.s32.f32 %v105_v25  ;;  %v652_v28 = vshrl.u32 %v651_v22, 23  ;;  %v3573_v27 = vsel %vm3542_vm3, 0, %v117_v21 }
  0x6a   :  { %v1262_v12 = vsel %vm1260_vm6, %v4602_v23, %v3555_v59  ;;  %v109_v34 = vor.u32 4788187, %v108_v26  ;;  %v295_v32 = vsel %vm293_vm8, %v294_v31, %v3537_v16  ;;  %v942_v4 = vadd.s32 3, %v3573_v27 }
  0x6b   :  { %v1259_v30 = vsel %vm1257_vm5, %v3547_v17, %v4603_v49  ;;  %v296_v40 = vadd.s32 %v295_v32, %v291_v24  ;;  %v2373_v0 = vadd.s32 4294967169, %v652_v28  ;;  %v4614_v44 = vand.u32 2147483647, %v3531_v2  ;;  %v3831_v49 = vld [vmem:[%s4593_s2 + $0x2e8] sm:$0xff] }
  0x6c   :  { %v1263_v6 = vsel %vm1256_vm7, %v1259_v30, %v1262_v12  ;;  %v110_v38 = vand.u32 2147483647, %v109_v34  ;;  %v3588_v54 = vand.u32 3, %v942_v4  ;;  %v2757_v21 = vpack.c.bf16 %v3598_v56, %v3593_v55  ;;  %v3748_v56 = vld [vmem:[%s4595_s1 + $0x80] sm:$0xff] }
  0x6d   :  { %v1264_v13 = vsel %vm431_vm1, nan, %v1263_v6  ;;  %v297_v29 = vadd.s32 536870912, %v296_v40  ;;  %v658_v43 = vadd.s32 1, %v2373_v0  ;;  %v655_v57 = vand.u32 8388607, %v4614_v44 }
  0x6e   :  { %1813 = vmatprep.mubr.f32.mxu1 %v1264_v13  ;;  %v113_v61 = vmul.f32 %v112_v50, %v110_v38  ;;  %vm945_vm10 = vcmp.eq.s32.totalorder %v3588_v54, 0  ;;  %vm944_vm11 = vcmp.lt.s32.totalorder %v3588_v54, 2  ;;  %vm948_vm13 = vcmp.eq.s32.totalorder %v3588_v54, 2 }
  0x6f   :  { %v3580_v47 = vshrl.u32 %v297_v29, 30  ;;  %vm659_vm9 = vcmp.gt.s32.totalorder %v658_v43, 0  ;;  %v656_v26 = vor.u32 8388608, %v655_v57  ;;  %vm122_vm14 = vweird.f32 %v3234_v36 }
  0x70   :  { %v114_v63 = vxor.u32 2147483648, %v113_v61  ;;  %v660_v51 = vsel %vm659_vm9, %v658_v43, 0  ;;  %vm238_vm0 = vcmp.lt.s32.totalorder %v3324_v42, 0  ;;  %v292_v38 = vadd.s32 %v3536_v60, %v3534_v11 }
  0x71   :  { %v299_v62 = vshll.u32 %v3580_v47, 30  ;;  %v662_v58 = vand.u32 31, %v660_v51  ;;  %v3604_v16 = vshrl.u32 %v660_v51, 5  ;;  %v3630_v43 = vshll.u32 %v656_v26, 8 }
  0x72   :  { %v115_v52 = vsel %vm32_vm4, %v114_v63, %v113_v61  ;;  %v322_v11 = vsub.s32 4, %v3580_v47  ;;  %vm3708_vm6 = vcmp.le.f32.partialorder %v236_v15, 0.7853982  ;;  %v3732_v15 = vld [vmem:[%s4593_s2 + $0x308] sm:$0xff]  ;;  %vm650_vm8 = vcmp.lt.s32.totalorder %v3531_v2, 0 }
  0x73   :  { %v118_v53 = vsel %vm3542_vm3, %v3234_v36, %v115_v52  ;;  %v3602_v41 = vsub.s32 %v296_v40, %v299_v62  ;;  %v663_v45 = vsub.s32 32, %v662_v58  ;;  %v665_v9 = vshll.u32 %v4620_v1, %v662_v58 }
  0x74   :  { %2958 = vcosq.f32 %v118_v53  ;;  %v668_v22 = vshll.u32 %v4610_v3, %v662_v58  ;;  %v671_v25 = vshll.u32 %v4612_v5, %v662_v58  ;;  %v674_v50 = vshll.u32 %v4615_v8, %v662_v58 }
  0x75   :  { %2960 = vsinq.f32 %v118_v53  ;;  %v302_v48 = vsub.s32 0, %v3602_v41  ;;  %v666_v24 = vshrl.u32 %v4610_v3, %v663_v45  ;;  %v669_v31 = vshrl.u32 %v4612_v5, %v663_v45 }
  0x76   :  { %v672_v12 = vshrl.u32 %v4615_v8, %v663_v45  ;;  %v675_v28 = vshrl.u32 %v4618_v10, %v663_v45  ;;  %v677_v6 = vshll.u32 %v4618_v10, %v662_v58  ;;  %vm680_vm15 = vcmp.lt.s32.totalorder %v3604_v16, 1 }
  0x77   :  { %v2358_v34 = vmin.u32 %v302_v48, %v3602_v41  ;;  %v667_v30 = vor.u32 %v666_v24, %v665_v9  ;;  %v670_v32 = vor.u32 %v669_v31, %v668_v22  ;;  %v664_v0 = vshrl.u32 %v4620_v1, %v663_v45 }
  0x78   :  { %v673_v13 = vor.u32 %v672_v12, %v671_v25  ;;  %v676_v61 = vor.u32 %v675_v28, %v674_v50  ;;  %v678_v29 = vshrl.u32 %v2984_v20, %v663_v45  ;;  %vm682_vm2 = vcmp.lt.s32.totalorder %v3604_v16, 3  ;;  %v1660_v50 = vld [vmem:[%s4593_s2 + $0x298] sm:$0xff] }
  0x79   :  { %v304_v40 = vclz %v2358_v34  ;;  %vm681_vm3 = vcmp.lt.s32.totalorder %v3604_v16, 2  ;;  %vm683_vm4 = vcmp.lt.s32.totalorder %v3604_v16, 4  ;;  %v688_v63 = vsel %vm680_vm15, %v667_v30, %v670_v32  ;;  %v1659_v34 = vld [vmem:[%s4593_s2 + $0x290] sm:$0xff]  ;;  %v3715_v16 = vld [vmem:[%s4593_s2 + $0x300] sm:$0xff] }
  0x7a   :  { %v679_v60 = vor.u32 %v678_v29, %v677_v6  ;;  %v685_v51 = vsel %vm683_vm4, %v673_v13, 2102212464  ;;  %v689_v52 = vsel %vm683_vm4, %v676_v61, 920167782  ;;  %v684_v53 = vsel %vm680_vm15, %v664_v0, %v667_v30 }
  0x7b   :  { %v2359_v4 = vadd.s32 4294967294, %v304_v40  ;;  %v690_v57 = vsel %vm682_vm2, %v673_v13, %v689_v52  ;;  %v692_v58 = vsel %vm680_vm15, %v670_v32, %v673_v13  ;;  %v686_v22 = vsel %vm682_vm2, %v670_v32, %v685_v51 }
  0x7c   :  { %v691_v25 = vsel %vm681_vm3, %v688_v63, %v690_v57  ;;  %v693_v30 = vsel %vm683_vm4, %v679_v60, 1326507024  ;;  %v2759_v63 = vpack.c.bf16 %v1660_v50, %v1659_v34  ;;  %v1643_v60 = vld [vmem:[%s4593_s2 + $0x210] sm:$0xff]  ;;  %v1662_v57 = vld [vmem:[%s4593_s2 + $0x2a8] sm:$0xff]  ;;  %v1645_v34 = vld [vmem:[%s4593_s2 + $0x220] sm:$0xff]  ;;  %vm328_vm15 = vweird.f32 %v3324_v42 }
  0x7d   :  { %vm2360_vm5 = vcmp.lt.s32.totalorder %v2359_v4, 0  ;;  %v694_v13 = vsel %vm682_vm2, %v676_v61, %v693_v30  ;;  %v1646_v50 = vld [vmem:[%s4593_s2 + $0x228] sm:$0xff]  ;;  %v3754_v30 = vld [vmem:[%s4594_s0 + $0x20] sm:$0xff] }
  0x7e   :  { %v3641_v62 = vpop.eup %2958  ;;  %v307_v48 = vsel %vm2360_vm5, 0, %v2359_v4  ;;  %v323_v4 = vsel %vm238_vm0, %v322_v11, %v3580_v47  ;;  %v695_v51 = vsel %vm681_vm3, %v692_v58, %v694_v13  ;;  %v687_v47 = vsel %vm681_vm3, %v684_v53, %v686_v22  ;;  %v1661_v11 = vld [vmem:[%s4593_s2 + $0x2a0] sm:$0xff]  ;;  %v3724_v22 = vld [vmem:[%s4594_s0 + $0x28] sm:$0xff] }
  0x7f   :  { %v3649_v45 = vpop.eup %2960  ;;  %v4604_v9 = vxor.u32 2147483648, %v3641_v62  ;;  %v308_v24 = vsub.s32 32, %v307_v48  ;;  %v309_v31 = vshll.u32 %v3602_v41, %v307_v48  ;;  %v312_v12 = vsub.s32 4294967266, %v307_v48 }
  0x80   :  { %v4607_v26 = vxor.u32 2147483648, %v3649_v45  ;;  %v3672_v41 = vmul.u32.u64.low %v3630_v43, %v691_v25  ;;  %v3673_v32 = vmul.u32.u64.high %v3630_v43, %v691_v25, %v3672_v41  ;;  %v3743_v55 = vsel %vm3708_vm6, 0, %v323_v4 }
  0x81   :  { %v950_v28 = vsel %vm948_vm13, %v4604_v9, %v3649_v45  ;;  %v310_v40 = vshrl.u32 %v292_v38, %v308_v24  ;;  %v313_v0 = vadd.s32 127, %v312_v12  ;;  %v1644_v38 = vld [vmem:[%s4593_s2 + $0x218] sm:$0xff]  ;;  %v548_v13 = vand.u32 2139095040, %v3724_v22  ;;  %v3836_v9 = vld [vmem:[%s4593_s2 + $0x260] sm:$0xff] }
  0x82   :  { %v947_v6 = vsel %vm945_vm10, %v3641_v62, %v4607_v26  ;;  %v3718_v53 = vmul.u32.u64.low %v3630_v43, %v695_v51  ;;  %v3719_v48 = vmul.u32.u64.high %v3630_v43, %v695_v51, %v3718_v53  ;;  %v706_v12 = vadd.s32 1, %v3673_v32 }
  0x83   :  { %v951_v29 = vsel %vm944_vm11, %v947_v6, %v950_v28  ;;  %v311_v61 = vor.u32 %v310_v40, %v309_v31  ;;  %v314_v52 = vshll.u32 %v313_v0, 23  ;;  %v2761_v31 = vpack.c.bf16 %v1644_v38, %v1643_v60  ;;  %v3759_v40 = vld [vmem:[%s4595_s1 + $0x88] sm:$0xff]  ;;  %v1663_v0 = vld [vmem:[%s4593_s2 + $0x2b0] sm:$0xff]  ;;  %v1648_v60 = vld [vmem:[%s4593_s2 + $0x238] sm:$0xff] }
  0x84   :  { %v952_v54 = vsel %vm122_vm14, nan, %v951_v29  ;;  %v2763_v28 = vpack.c.bf16 %v1662_v57, %v1661_v11  ;;  %vm705_vm7 = vc.u32 %v3719_v48, %v3672_v41  ;;  %v2765_v4 = vpack.c.bf16 %v1646_v50, %v1645_v34  ;;  %v1665_v38 = vld [vmem:[%s4593_s2 + $0x2c0] sm:$0xff]  ;;  %v3794_v11 = vld [vmem:[%s4593_s2 + $0x248] sm:$0xff] }
  0x85   :  { %1744 = vmatmul.mubr.f32.vlgmr.msra.gmra.mrb[0].mxu0 %v952_v54  ;;  %v315_v25 = vor.u32 4788187, %v314_v52  ;;  %v318_v24 = vcvt.s32.f32 %v311_v61  ;;  %v1150_v54 = vadd.s32 3, %v3743_v55  ;;  %v707_v61 = vsel %vm705_vm7, %v706_v12, %v3673_v32  ;;  %v1666_v52 = vld [vmem:[%s4593_s2 + $0x2c8] sm:$0xff]  ;;  %v3799_v32 = vld [vmem:[%s4593_s2 + $0x2d0] sm:$0xff] }
  0x86   :  { %2758 = vmatpush3.bf16.msra.mxu0 %v2757_v21  ;;  %v703_v21 = vmul.u32 %v3630_v43, %v687_v47  ;;  %v1664_v43 = vld [vmem:[%s4593_s2 + $0x2b8] sm:$0xff]  ;;  %v3789_v47 = vld [vmem:[%s4593_s2 + $0x240] sm:$0xff]  ;;  %v549_v57 = vshrl.u32 %v548_v13, 23  ;;  %v4605_v12 = vand.u32 2147483647, %v3754_v30  ;;  %v2771_v7 = vpack.c.bf16 %v1666_v52, %v1665_v38  ;;  %v3852_v52 = vld [vmem:[%s4593_s2 + $0x2f0] sm:$0xff] }
  0x87   :  { %2760 = vmatprep.subr.bf16.mxu0 %v2759_v63  ;;  %v316_v6 = vand.u32 2147483647, %v315_v25  ;;  %v1647_v63 = vld [vmem:[%s4593_s2 + $0x230] sm:$0xff]  ;;  %v2767_v25 = vpack.c.bf16 %v1664_v43, %v1663_v0  ;;  %v445_v43 = vand.u32 2139095040, %v3754_v30  ;;  %v2773_v23 = vpack.c.bf16 %v3794_v11, %v3789_v47  ;;  %v3857_v47 = vld [vmem:[%s4593_s2 + $0x2f8] sm:$0xff] }
  0x88   :  { %v708_v53 = vadd.s32 %v707_v61, %v703_v21  ;;  %v3813_v21 = vld [vmem:[%s4593_s2 + $0x250] sm:$0xff]  ;;  %v2369_v0 = vadd.s32 4294967169, %v549_v57  ;;  %v2769_v61 = vpack.c.bf16 %v1648_v60, %v1647_v63  ;;  %v3841_v57 = vld [vmem:[%s4593_s2 + $0x268] sm:$0xff]  ;;  %v3845_v60 = vand.u32 3, %v1150_v54 }
  0x89   :  { %v319_v51 = vmul.f32 %v318_v24, %v316_v6  ;;  %v3804_v24 = vld [vmem:[%s4593_s2 + $0x2d8] sm:$0xff]  ;;  %v3823_v6 = vld [vmem:[%s4593_s2 + $0x2e0] sm:$0xff]  ;;  %vm2985_vm7 = vmmov 0  }
  0x8a   :  { %2762 = vmatpush3.bf16.msra.mxu0 %v2761_v31  ;;  %v4606_v31 = vand.u32 2147483647, %v3724_v22  ;;  %v709_v13 = vadd.s32 536870912, %v708_v53  ;;  %v2775_v38 = vpack.c.bf16 %v3804_v24, %v3799_v32  ;;  %v555_v54 = vadd.s32 1, %v2369_v0  ;;  %v3870_v32 = vld [vmem:[%s4593_s2 + $0x278] sm:$0xff] }
  0x8b   :  { %2764 = vmatprep.subr.bf16.mxu0 %v2763_v28  ;;  %v320_v34 = vxor.u32 2147483648, %v319_v51  ;;  %v3818_v28 = vld [vmem:[%s4593_s2 + $0x258] sm:$0xff]  ;;  %vm1156_vm10 = vcmp.eq.s32.totalorder %v3845_v60, 2  ;;  %vm1153_vm11 = vcmp.eq.s32.totalorder %v3845_v60, 0  ;;  %vm1152_vm13 = vcmp.lt.s32.totalorder %v3845_v60, 2 }
  0x8c   :  { %v710_v11 = vshrl.u32 %v709_v13, 30  ;;  %v552_v24 = vand.u32 8388607, %v4606_v31  ;;  %v2777_v58 = vpack.c.bf16 %v3818_v28, %v3813_v21  ;;  %vm556_vm9 = vcmp.gt.s32.totalorder %v555_v54, 0 }
  0x8d   :  { %v321_v63 = vsel %vm238_vm0, %v320_v34, %v319_v51  ;;  %v3862_v51 = vld [vmem:[%s4593_s2 + $0x270] sm:$0xff]  ;;  %v3876_v34 = vand.u32 8388607, %v4605_v12  ;;  %v2779_v13 = vpack.c.bf16 %v3831_v49, %v3823_v6 }
  0x8e   :  { %2766 = vmatpush3.bf16.msra.mxu0 %v2765_v4  ;;  %v324_v4 = vsel %vm3708_vm6, %v3324_v42, %v321_v63  ;;  %v711_v0 = vshll.u32 %v710_v11, 30  ;;  %v557_v63 = vsel %vm556_vm9, %v555_v54, 0  ;;  %v553_v6 = vor.u32 8388608, %v552_v24  ;;  %v3914_v24 = vld [vmem:[%s4595_s1 + $0x188] sm:$0xff]  ;;  %v765_v42 = vld [vmem:[%s4595_s1 + $0x70] sm:$0xff] }
  0x8f   :  { %2768 = vmatprep.subr.bf16.mxu0 %v2767_v25  ;;  %2962 = vcosq.f32 %v324_v4  ;;  %v446_v25 = vshrl.u32 %v445_v43, 23  ;;  %v559_v28 = vand.u32 31, %v557_v63  ;;  %v3893_v43 = vadd.s32 %v3672_v41, %v3719_v48 }
  0x90   :  { %2964 = vsinq.f32 %v324_v4  ;;  %v3895_v49 = vsub.s32 %v708_v53, %v711_v0  ;;  %v734_v54 = vsub.s32 4, %v710_v11  ;;  %v3899_v4 = vshrl.u32 %v557_v63, 5  ;;  %v3909_v53 = vld [vmem:[%s4595_s1 + $0x180] sm:$0xff] }
  0x91   :  { %v560_v26 = vsub.s32 32, %v559_v28  ;;  %v2365_v35 = vadd.s32 4294967169, %v446_v25  ;;  %v562_v41 = vshll.u32 %v4620_v1, %v559_v28  ;;  %v565_v48 = vshll.u32 %v4610_v3, %v559_v28 }
  0x92   :  { %2770 = vmatpush3.bf16.msra.mxu0 %v2769_v61  ;;  %v714_v39 = vsub.s32 0, %v3895_v49  ;;  %v571_v61 = vshll.u32 %v4615_v8, %v559_v28  ;;  %v574_v29 = vshll.u32 %v4618_v10, %v559_v28  ;;  %v3923_v31 = vshll.u32 %v553_v6, 8 }
  0x93   :  { %2772 = vmatprep.subr.bf16.mxu0 %v2771_v7  ;;  %v568_v7 = vshll.u32 %v4612_v5, %v559_v28  ;;  %v563_v25 = vshrl.u32 %v4610_v3, %v560_v26  ;;  %v566_v0 = vshrl.u32 %v4612_v5, %v560_v26  ;;  %v569_v63 = vshrl.u32 %v4615_v8, %v560_v26 }
  0x94   :  { %v2374_v21 = vmin.u32 %v714_v39, %v3895_v49  ;;  %v572_v50 = vshrl.u32 %v4618_v10, %v560_v26  ;;  %v561_v12 = vshrl.u32 %v4620_v1, %v560_v26  ;;  %v452_v3 = vadd.s32 1, %v2365_v35 }
  0x95   :  { %v2822_v5 = vpack.c.bf16 %v3914_v24, %v3909_v53  ;;  %v735_v8 = vsel %vm650_vm8, %v734_v54, %v710_v11  ;;  %v564_v39 = vor.u32 %v563_v25, %v562_v41  ;;  %v570_v28 = vor.u32 %v569_v63, %v568_v7 }
  0x96   :  { %2774 = vmatpush3.bf16.msra.mxu0 %v2773_v23  ;;  %v575_v23 = vshrl.u32 %v2984_v20, %v560_v26  ;;  %v716_v44 = vclz %v2374_v21  ;;  %v573_v6 = vor.u32 %v572_v50, %v571_v61  ;;  %vm577_vm0 = vcmp.lt.s32.totalorder %v3899_v4, 1 }
  0x97   :  { %2776 = vmatprep.subr.bf16.mxu0 %v2775_v38  ;;  %v567_v38 = vor.u32 %v566_v0, %v565_v48  ;;  %v4631_v26 = vand.u32 2147483647, %v3531_v2  ;;  %vm579_vm3 = vcmp.lt.s32.totalorder %v3899_v4, 3  ;;  %vm580_vm4 = vcmp.lt.s32.totalorder %v3899_v4, 4 }
  0x98   :  { %v576_v10 = vor.u32 %v575_v23, %v574_v29  ;;  %v2375_v11 = vadd.s32 4294967294, %v716_v44  ;;  %vm578_vm5 = vcmp.lt.s32.totalorder %v3899_v4, 2  ;;  %v581_v50 = vsel %vm577_vm0, %v561_v12, %v564_v39 }
  0x99   :  { %v3931_v19 = vpop.eup %2962  ;;  %vm3939_vm2 = vcmp.le.f32.partialorder %v4631_v26, 0.7853982  ;;  %v586_v61 = vsel %vm580_vm4, %v573_v6, 920167782  ;;  %v4634_v41 = vpack.c.bf16 %v3841_v57, %v3836_v9  ;;  %v4635_v63 = vpack.c.bf16 %v3857_v47, %v3852_v52 }
  0x9a   :  { %2778 = vmatpush3.bf16.msra.mxu0 %v2777_v58  ;;  %v3934_v1 = vpop.eup %2964  ;;  %v335_v35 = vxor.u32 2147483648, %v3931_v19  ;;  %v582_v58 = vsel %vm580_vm4, %v570_v28, 2102212464  ;;  %vm2376_vm6 = vcmp.lt.s32.totalorder %v2375_v11, 0  ;;  %v587_v7 = vsel %vm579_vm3, %v570_v28, %v586_v61 }
  0x9b   :  { %2780 = vmatprep.subr.bf16.mxu0 %v2779_v13  ;;  %v332_v29 = vxor.u32 2147483648, %v3934_v1  ;;  %v585_v13 = vsel %vm577_vm0, %v564_v39, %v567_v38  ;;  %v719_v54 = vsel %vm2376_vm6, 0, %v2375_v11  ;;  %v583_v48 = vsel %vm579_vm3, %v567_v38, %v582_v58 }
  0x9c   :  { %v1158_v44 = vsel %vm1156_vm10, %v335_v35, %v3934_v1  ;;  %v720_v24 = vsub.s32 32, %v719_v54  ;;  %v721_v25 = vshll.u32 %v3895_v49, %v719_v54  ;;  %v724_v0 = vsub.s32 4294967266, %v719_v54 }
  0x9d   :  { %v1155_v12 = vsel %vm1153_vm11, %v3931_v19, %v332_v29  ;;  %v588_v57 = vsel %vm578_vm5, %v585_v13, %v587_v7  ;;  %v589_v23 = vsel %vm577_vm0, %v567_v38, %v570_v28  ;;  %v590_v60 = vsel %vm580_vm4, %v576_v10, 1326507024 }
  0x9e   :  { %2782 = vmatpush3.bf16.msra.mxu0 %v4634_v41  ;;  %v1159_v53 = vsel %vm1152_vm13, %v1155_v12, %v1158_v44  ;;  %v722_v49 = vshrl.u32 %v3893_v43, %v720_v24  ;;  %v725_v39 = vadd.s32 127, %v724_v0  ;;  %v584_v52 = vsel %vm578_vm5, %v581_v50, %v583_v48 }
  0x9f   :  { %2784 = vmatprep.subr.bf16.mxu0 %v4635_v63  ;;  %v1160_v9 = vsel %vm328_vm15, nan, %v1159_v53  ;;  %v591_v47 = vsel %vm579_vm3, %v573_v6, %v590_v60  ;;  %v4636_v26 = vpack.c.bf16 %v3732_v15, %v3715_v16  ;;  %v2986_v11 = vmov 0.0  }
  0xa0   :  { %1814 = vmatmul.mubr.f32.vlgmr.msra.gmra.mrb[0].mxu1 %v1160_v9  ;;  %v592_v10 = vsel %vm578_vm5, %v589_v23, %v591_v47  ;;  %v3999_v43 = vmul.u32.u64.low %v3923_v31, %v588_v57  ;;  %v4000_v38 = vmul.u32.u64.high %v3923_v31, %v588_v57, %v3999_v43  ;;  %vm453_vm9 = vcmp.gt.s32.totalorder %v452_v3, 0 }
  0xa1   :  { %2789 = vmatpush3.bf16.msra.mxu1 %v4636_v26  ;;  %2646 = vmatprep.mubr.msk.f32.mxu1 %vm2985_vm7, %v2986_v11  ;;  %v4637_v28 = vpack.c.bf16 %v3759_v40, %v3748_v56  ;;  %v723_v16 = vor.u32 %v722_v49, %v721_v25  ;;  %v726_v15 = vshll.u32 %v725_v39, 23  ;;  %v4638_v6 = vpack.c.bf16 %v3870_v32, %v3862_v51 }
  0xa2   :  { %v4010_v50 = vmul.u32.u64.low %v3923_v31, %v592_v10  ;;  %v4011_v4 = vmul.u32.u64.high %v3923_v31, %v592_v10, %v4010_v50  ;;  %v4015_v58 = vsel %vm3939_vm2, 0, %v735_v8  ;;  %v454_v44 = vsel %vm453_vm9, %v452_v3, 0 }
  0xa3   :  { %2791 = vmatprep.subr.bf16.mxu1 %v4637_v28  ;;  %2786 = vmatpush3.bf16.msra.mxu0 %v4638_v6  ;;  %v727_v13 = vor.u32 4788187, %v726_v15  ;;  %v730_v61 = vcvt.s32.f32 %v723_v16  ;;  %v600_v56 = vmul.u32 %v3923_v31, %v584_v52  ;;  %v456_v40 = vand.u32 31, %v454_v44 }
  0xa4   :  { %2823 = vmatprep.subr.bf16.mxu0 %v2822_v5  ;;  %v603_v12 = vadd.s32 1, %v4000_v38  ;;  %v4639_v51 = vor.u32 8388608, %v3876_v34  ;;  %v4024_v54 = vand.u32 3, %v3393_v46  ;;  %v1566_v8 = vadd.s32 3, %v4015_v58 }
  0xa5   :  { %v728_v41 = vand.u32 2147483647, %v727_v13  ;;  %vm602_vm10 = vc.u32 %v4011_v4, %v3999_v43  ;;  %v457_v3 = vsub.s32 32, %v456_v40  ;;  %v455_v31 = vshrl.u32 %v454_v44, 5 }
  0xa6   :  { %v4021_v32 = vshll.u32 %v4639_v51, 8  ;;  %v604_v5 = vsel %vm602_vm10, %v603_v12, %v4000_v38  ;;  %v4640_v48 = vmov 683565275   ;;  %v4641_v53 = vmov 2475754826  }
  0xa7   :  { %v459_v7 = vshll.u32 %v4640_v48, %v456_v40  ;;  %v462_v24 = vshll.u32 %v4641_v53, %v456_v40  ;;  %v731_v34 = vmul.f32 %v730_v61, %v728_v41  ;;  %v605_v25 = vadd.s32 %v604_v5, %v600_v56 }
  0xa8   :  { %v460_v0 = vshrl.u32 %v4641_v53, %v457_v3  ;;  %v4642_v46 = vmov 2131351028   ;;  %v4643_v57 = vmov 2102212464   ;;  %v4644_v49 = vmov 920167782  }
  0xa9   :  { %v465_v63 = vshll.u32 %v4642_v46, %v456_v40  ;;  %v463_v9 = vshrl.u32 %v4642_v46, %v457_v3  ;;  %v466_v23 = vshrl.u32 %v4643_v57, %v457_v3  ;;  %v468_v60 = vshll.u32 %v4643_v57, %v456_v40 }
  0xaa   :  { %v469_v39 = vshrl.u32 %v4644_v49, %v457_v3  ;;  %v732_v52 = vxor.u32 2147483648, %v731_v34  ;;  %v4038_v47 = vand.u32 3, %v1566_v8  ;;  %v606_v26 = vadd.s32 536870912, %v605_v25 }
  0xab   :  { %v471_v10 = vshll.u32 %v4644_v49, %v456_v40  ;;  %v461_v38 = vor.u32 %v460_v0, %v459_v7  ;;  %v464_v28 = vor.u32 %v463_v9, %v462_v24  ;;  %v472_v15 = vshrl.u32 %v2984_v20, %v457_v3 }
  0xac   :  { %v470_v16 = vor.u32 %v469_v39, %v468_v60  ;;  %v733_v6 = vsel %vm650_vm8, %v732_v52, %v731_v34  ;;  %v4044_v50 = vshrl.u32 %v606_v26, 30  ;;  %v467_v44 = vor.u32 %v466_v23, %v465_v63 }
  0xad   :  { %vm474_vm11 = vcmp.lt.s32.totalorder %v455_v31, 1  ;;  %v736_v13 = vsel %vm3939_vm2, %v3531_v2, %v733_v6  ;;  %v458_v61 = vshrl.u32 %v4640_v48, %v457_v3  ;;  %vm476_vm13 = vcmp.lt.s32.totalorder %v455_v31, 3 }
  0xae   :  { %vm477_vm0 = vcmp.lt.s32.totalorder %v455_v31, 4  ;;  %2966 = vcosq.f32 %v736_v13  ;;  %v608_v56 = vshll.u32 %v4044_v50, 30  ;;  %v473_v40 = vor.u32 %v472_v15, %v471_v10 }
  0xaf   :  { %vm475_vm3 = vcmp.lt.s32.totalorder %v455_v31, 2  ;;  %2968 = vsinq.f32 %v736_v13  ;;  %v479_v20 = vsel %vm477_vm0, %v467_v44, 2102212464  ;;  %v482_v12 = vsel %vm474_vm11, %v461_v38, %v464_v28 }
  0xb0   :  { %v483_v51 = vsel %vm477_vm0, %v470_v16, 920167782  ;;  %v4054_v41 = vsub.s32 %v605_v25, %v608_v56  ;;  %v123_v8 = vand.u32 3, %v3573_v27  ;;  %v478_v3 = vsel %vm474_vm11, %v458_v61, %v461_v38 }
  0xb1   :  { %v484_v21 = vsel %vm476_vm13, %v467_v44, %v483_v51  ;;  %v480_v5 = vsel %vm476_vm13, %v464_v28, %v479_v20  ;;  %v486_v7 = vsel %vm474_vm11, %v464_v28, %v467_v44  ;;  %vm1568_vm8 = vcmp.lt.s32.totalorder %v4038_v47, 2 }
  0xb2   :  { %v485_v48 = vsel %vm475_vm3, %v482_v12, %v484_v21  ;;  %v611_v53 = vsub.s32 0, %v4054_v41  ;;  %v487_v24 = vsel %vm477_vm0, %v473_v40, 1326507024  ;;  %vm228_vm2 = vcmp.eq.s32.totalorder %v4024_v54, 0 }
  0xb3   :  { %vm740_vm4 = vweird.f32 %v3531_v2  ;;  %v488_v27 = vsel %vm476_vm13, %v470_v16, %v487_v24  ;;  %v4069_v34 = vmul.u32.u64.low %v4021_v32, %v485_v48  ;;  %v4070_v25 = vmul.u32.u64.high %v4021_v32, %v485_v48, %v4069_v34  ;;  %v751_v16 = vld [vmem:[%s4595_s1] sm:$0xff]  ;;  %v816_v2 = vld [vmem:[%s4595_s1 + $0x208] sm:$0xff] }
  0xb4   :  { %vm231_vm5 = vcmp.eq.s32.totalorder %v4024_v54, 2  ;;  %vm1569_vm6 = vcmp.eq.s32.totalorder %v4038_v47, 0  ;;  %vm1675_vm9 = vcmask 130048   ;;  %v2370_v0 = vmin.u32 %v611_v53, %v4054_v41  ;;  %v754_v53 = vld [vmem:[%s4595_s1 + $0x18] sm:$0xff] }
  0xb5   :  { %v481_v46 = vsel %vm475_vm3, %v478_v3, %v480_v5  ;;  %v489_v63 = vsel %vm475_vm3, %v486_v7, %v488_v27  ;;  %vm227_vm10 = vcmp.lt.s32.totalorder %v4024_v54, 2  ;;  %vm125_vm11 = vcmp.eq.s32.totalorder %v123_v8, 0  ;;  %v753_v7 = vld [vmem:[%s4595_s1 + $0x10] sm:$0xff] }
  0xb6   :  { %v4079_v9 = vmul.u32.u64.low %v4021_v32, %v489_v63  ;;  %v4080_v57 = vmul.u32.u64.high %v4021_v32, %v489_v63, %v4079_v9  ;;  %v613_v23 = vclz %v2370_v0  ;;  %v4645_v60 = vxor.u32 2147483648, %v3486_v33 }
  0xb7   :  { %v4646_v39 = vxor.u32 2147483648, %v3482_v14  ;;  %vm124_vm13 = vcmp.lt.s32.totalorder %v123_v8, 2  ;;  %v497_v31 = vmul.u32 %v4021_v32, %v481_v46  ;;  %v500_v26 = vadd.s32 1, %v4070_v25 }
  0xb8   :  { %v230_v49 = vsel %vm228_vm2, %v3482_v14, %v4645_v60  ;;  %v4647_v10 = vxor.u32 2147483648, %v3649_v45  ;;  %vm128_vm0 = vcmp.eq.s32.totalorder %v123_v8, 2  ;;  %v4094_v28 = vpop.eup %2966  ;;  %vm1572_vm3 = vcmp.eq.s32.totalorder %v4038_v47, 2  ;;  %v752_v14 = vld [vmem:[%s4595_s1 + $0x8] sm:$0xff]  ;;  %v771_v47 = vld [vmem:[%s4595_s1 + $0xa0] sm:$0xff] }
  0xb9   :  { %v233_v52 = vsel %vm231_vm5, %v4646_v39, %v3486_v33  ;;  %v601_v33 = vadd.s32 %v3999_v43, %v4011_v4  ;;  %v2371_v32 = vadd.s32 4294967294, %v613_v23  ;;  %v4648_v15 = vxor.u32 2147483648, %v3641_v62  ;;  %v4108_v44 = vpop.eup %2968  ;;  %v769_v43 = vld [vmem:[%s4595_s1 + $0x90] sm:$0xff]  ;;  %v756_v39 = vld [vmem:[%s4595_s1 + $0x28] sm:$0xff] }
  0xba   :  { %v127_v38 = vsel %vm125_vm11, %v3641_v62, %v4647_v10  ;;  %v747_v13 = vxor.u32 2147483648, %v4094_v28  ;;  %vm499_vm2 = vc.u32 %v4080_v57, %v4069_v34  ;;  %v234_v61 = vsel %vm227_vm10, %v230_v49, %v233_v52  ;;  %v770_v62 = vld [vmem:[%s4595_s1 + $0x98] sm:$0xff]  ;;  %v755_v49 = vld [vmem:[%s4595_s1 + $0x20] sm:$0xff] }
  0xbb   :  { %v130_v6 = vsel %vm128_vm0, %v4648_v15, %v3649_v45  ;;  %v744_v40 = vxor.u32 2147483648, %v4108_v44  ;;  %vm2372_vm5 = vcmp.lt.s32.totalorder %v2371_v32, 0  ;;  %v501_v45 = vsel %vm499_vm2, %v500_v26, %v4070_v25  ;;  %v772_v25 = vld [vmem:[%s4595_s1 + $0xa8] sm:$0xff]  ;;  %v774_v26 = vld [vmem:[%s4595_s1 + $0xb8] sm:$0xff] }
  0xbc   :  { %v131_v56 = vsel %vm124_vm13, %v127_v38, %v130_v6  ;;  %v1574_v54 = vsel %vm1572_vm3, %v747_v13, %v4108_v44  ;;  %v2792_v20 = vpack.c.bf16 %v752_v14, %v751_v16  ;;  %v616_v12 = vsel %vm2372_vm5, 0, %v2371_v32  ;;  %v757_v6 = vld [vmem:[%s4595_s1 + $0x30] sm:$0xff] }
  0xbd   :  { %v4126_v4 = vsel %vm122_vm14, nan, %v131_v56  ;;  %v502_v51 = vadd.s32 %v501_v45, %v497_v31  ;;  %v1571_v21 = vsel %vm1569_vm6, %v4094_v28, %v744_v40  ;;  %v617_v8 = vsub.s32 32, %v616_v12  ;;  %v773_v31 = vld [vmem:[%s4595_s1 + $0xb0] sm:$0xff] }
  0xbe   :  { %v618_v36 = vshll.u32 %v4054_v41, %v616_v12  ;;  %v621_v3 = vsub.s32 4294967266, %v616_v12  ;;  %v1575_v5 = vsel %vm1568_vm8, %v1571_v21, %v1574_v54  ;;  %v2794_v48 = vpack.c.bf16 %v770_v62, %v769_v43  ;;  %v775_v43 = vld [vmem:[%s4595_s1 + $0xc0] sm:$0xff]  ;;  %v776_v62 = vld [vmem:[%s4595_s1 + $0xc8] sm:$0xff] }
  0xbf   :  { %v503_v24 = vadd.s32 536870912, %v502_v51  ;;  %v235_v27 = vsel %vm225_vm12, nan, %v234_v61  ;;  %v1576_v41 = vsel %vm740_vm4, nan, %v1575_v5  ;;  %v619_v0 = vshrl.u32 %v601_v33, %v617_v8  ;;  %v758_v61 = vld [vmem:[%s4595_s1 + $0x38] sm:$0xff]  ;;  %v760_v12 = vld [vmem:[%s4595_s1 + $0x48] sm:$0xff]  ;;  %v777_v8 = vld [vmem:[%s4595_s1 + $0xd0] sm:$0xff] }
  0xc0   :  { %v622_v46 = vadd.s32 127, %v621_v3  ;;  %2647 = vmatmul.mubr.msk.f32.vlgmr.msra.gmra.mrb[2].mxu1 %vm1675_vm9, %v1576_v41  ;;  %v2796_v18 = vpack.c.bf16 %v754_v53, %v753_v7  ;;  %v2798_v60 = vpack.c.bf16 %v772_v25, %v771_v47  ;;  %v631_v16 = vsub.s32 4, %v4044_v50 }
  0xc1   :  { %v4158_v63 = vshrl.u32 %v503_v24, 30  ;;  %2793 = vmatpush3.bf16.msra.mxu1 %v2792_v20  ;;  %v620_v9 = vor.u32 %v619_v0, %v618_v36  ;;  %2026 = vmatprep.mubr.f32.mxu1 %v235_v27  ;;  %v2800_v33 = vpack.c.bf16 %v756_v39, %v755_v49  ;;  %v2802_v15 = vpack.c.bf16 %v774_v26, %v773_v31  ;;  %v759_v20 = vld [vmem:[%s4595_s1 + $0x40] sm:$0xff]  ;;  %v761_v0 = vld [vmem:[%s4595_s1 + $0x50] sm:$0xff]  ;;  %v764_v49 = vld [vmem:[%s4595_s1 + $0x68] sm:$0xff] }
  0xc2   :  { %v623_v23 = vshll.u32 %v622_v46, 23  ;;  %2795 = vmatprep.subr.bf16.mxu1 %v2794_v48  ;;  %vm547_vm12 = vcmp.lt.s32.totalorder %v3724_v22, 0  ;;  %v2804_v21 = vpack.c.bf16 %v758_v61, %v757_v6  ;;  %v4649_v36 = vand.u32 2147483647, %v3724_v22 }
  0xc3   :  { %v505_v52 = vshll.u32 %v4158_v63, 30  ;;  %v627_v38 = vcvt.s32.f32 %v620_v9  ;;  %v632_v54 = vsel %vm547_vm12, %v631_v16, %v4044_v50  ;;  %v778_v50 = vld [vmem:[%s4595_s1 + $0xd8] sm:$0xff]  ;;  %v329_v5 = vand.u32 3, %v3743_v55  ;;  %v779_v9 = vld [vmem:[%s4595_s1 + $0xe0] sm:$0xff]  ;;  %v781_v16 = vld [vmem:[%s4595_s1 + $0xf0] sm:$0xff] }
  0xc4   :  { %v624_v10 = vor.u32 4788187, %v623_v23  ;;  %vm546_vm14 = vcmp.le.f32.partialorder %v4649_v36, 0.7853982  ;;  %v2806_v48 = vpack.c.bf16 %v776_v62, %v775_v43  ;;  %v2808_v27 = vpack.c.bf16 %v760_v12, %v759_v20  ;;  %v780_v23 = vld [vmem:[%s4595_s1 + $0xe8] sm:$0xff] }
  0xc5   :  { %v4174_v14 = vsub.s32 %v502_v51, %v505_v52  ;;  %2797 = vmatpush3.bf16.msra.mxu1 %v2796_v18  ;;  %v634_v7 = vsel %vm546_vm14, 0, %v632_v54  ;;  %v2810_v41 = vpack.c.bf16 %v778_v50, %v777_v8  ;;  %v498_v55 = vadd.s32 %v4069_v34, %v4080_v57  ;;  %v762_v18 = vld [vmem:[%s4595_s1 + $0x58] sm:$0xff]  ;;  %v832_v8 = vld [vmem:[%s4595_s1 + $0x288] sm:$0xff] }
  0xc6   :  { %v625_v32 = vand.u32 2147483647, %v624_v10  ;;  %2799 = vmatprep.subr.bf16.mxu1 %v2798_v60  ;;  %v1462_v46 = vadd.s32 3, %v634_v7  ;;  %vm331_vm8 = vcmp.eq.s32.totalorder %v329_v5, 0  ;;  %vm330_vm10 = vcmp.lt.s32.totalorder %v329_v5, 2  ;;  %v763_v60 = vld [vmem:[%s4595_s1 + $0x60] sm:$0xff] }
  0xc7   :  { %v508_v56 = vsub.s32 0, %v4174_v14  ;;  %v333_v34 = vsel %vm331_vm8, %v3931_v19, %v332_v29  ;;  %vm334_vm11 = vcmp.eq.s32.totalorder %v329_v5, 2  ;;  %v2812_v29 = vpack.c.bf16 %v762_v18, %v761_v0  ;;  %v834_v0 = vld [vmem:[%s4595_s1 + $0x298] sm:$0xff] }
  0xc8   :  { %v628_v45 = vmul.f32 %v627_v38, %v625_v32  ;;  %v336_v26 = vsel %vm334_vm11, %v335_v35, %v3934_v1  ;;  %v2814_v10 = vpack.c.bf16 %v780_v23, %v779_v9  ;;  %v1463_v38 = vand.u32 3, %v1462_v46 }
  0xc9   :  { %v2366_v51 = vmin.u32 %v508_v56, %v4174_v14  ;;  %2801 = vmatpush3.bf16.msra.mxu1 %v2800_v33  ;;  %v782_v33 = vld [vmem:[%s4595_s1 + $0xf8] sm:$0xff]  ;;  %v337_v32 = vsel %vm330_vm10, %v333_v34, %v336_v26  ;;  %v741_v1 = vand.u32 3, %v4015_v58  ;;  %v2816_v35 = vpack.c.bf16 %v764_v49, %v763_v60 }
  0xca   :  { %v629_v3 = vxor.u32 2147483648, %v628_v45  ;;  %2803 = vmatprep.subr.bf16.mxu1 %v2802_v15  ;;  %v4248_v19 = vsel %vm328_vm15, nan, %v337_v32  ;;  %v638_v6 = vand.u32 3, %v634_v7  ;;  %vm637_vm13 = vweird.f32 %v3724_v22  ;;  %v766_v58 = vld [vmem:[%s4595_s1 + $0x78] sm:$0xff]  ;;  %v820_v32 = vld [vmem:[%s4595_s1 + $0x228] sm:$0xff] }
  0xcb   :  { %v510_v53 = vclz %v2366_v51  ;;  %v2818_v43 = vpack.c.bf16 %v782_v33, %v781_v16  ;;  %vm1465_vm0 = vcmp.eq.s32.totalorder %v1463_v38, 0  ;;  %vm742_vm3 = vcmp.lt.s32.totalorder %v741_v1, 2  ;;  %v819_v33 = vld [vmem:[%s4595_s1 + $0x220] sm:$0xff] }
  0xcc   :  { %v630_v24 = vsel %vm547_vm12, %v629_v3, %v628_v45  ;;  %vm743_vm2 = vcmp.eq.s32.totalorder %v741_v1, 0  ;;  %vm746_vm5 = vcmp.eq.s32.totalorder %v741_v1, 2  ;;  %vm1468_vm15 = vcmp.eq.s32.totalorder %v1463_v38, 2 }
  0xcd   :  { %v633_v47 = vsel %vm546_vm14, %v3724_v22, %v630_v24  ;;  %v2367_v25 = vadd.s32 4294967294, %v510_v53  ;;  %2805 = vmatpush3.bf16.msra.mxu1 %v2804_v21  ;;  %v745_v54 = vsel %vm743_vm2, %v4094_v28, %v744_v40  ;;  %v748_v20 = vsel %vm746_vm5, %v747_v13, %v4108_v44  ;;  %v831_v21 = vld [vmem:[%s4595_s1 + $0x280] sm:$0xff] }
  0xce   :  { %2970 = vcosq.f32 %v633_v47  ;;  %2807 = vmatprep.subr.bf16.mxu1 %v2806_v48  ;;  %v528_v51 = vsub.s32 4, %v4158_v63  ;;  %vm643_vm12 = vcmp.eq.s32.totalorder %v638_v6, 2  ;;  %v749_v50 = vsel %vm742_vm3, %v745_v54, %v748_v20  ;;  %v815_v53 = vld [vmem:[%s4595_s1 + $0x200] sm:$0xff]  ;;  %v824_v20 = vld [vmem:[%s4595_s1 + $0x248] sm:$0xff] }
  0xcf   :  { %2972 = vsinq.f32 %v633_v47  ;;  %vm2368_vm6 = vcmp.lt.s32.totalorder %v2367_v25, 0  ;;  %vm640_vm14 = vcmp.eq.s32.totalorder %v638_v6, 0  ;;  %v4274_v28 = vsel %vm740_vm4, nan, %v749_v50  ;;  %v823_v54 = vld [vmem:[%s4595_s1 + $0x240] sm:$0xff]  ;;  %v826_v47 = vld [vmem:[%s4595_s1 + $0x258] sm:$0xff] }
  0xd0   :  { %v513_v57 = vsel %vm2368_vm6, 0, %v2367_v25  ;;  %vm1464_vm8 = vcmp.lt.s32.totalorder %v1463_v38, 2  ;;  %v2820_v13 = vpack.c.bf16 %v766_v58, %v765_v42  ;;  %vm639_vm6 = vcmp.lt.s32.totalorder %v638_v6, 2  ;;  %v833_v25 = vld [vmem:[%s4595_s1 + $0x290] sm:$0xff]  ;;  %v783_v58 = vld [vmem:[%s4595_s1 + $0x100] sm:$0xff] }
  0xd1   :  { %v514_v39 = vsub.s32 32, %v513_v57  ;;  %v515_v52 = vshll.u32 %v4174_v14, %v513_v57  ;;  %v518_v31 = vsub.s32 4294967266, %v513_v57  ;;  %2809 = vmatpush3.bf16.msra.mxu1 %v2808_v27  ;;  %v2854_v7 = vpack.c.bf16 %v832_v8, %v831_v21 }
  0xd2   :  { %2811 = vmatprep.subr.bf16.mxu1 %v2810_v41  ;;  %v4650_v41 = vand.u32 2147483647, %v3754_v30  ;;  %vm444_vm10 = vcmp.lt.s32.totalorder %v3754_v30, 0  ;;  %v2856_v57 = vpack.c.bf16 %v816_v2, %v815_v53  ;;  %v2858_v49 = vpack.c.bf16 %v834_v0, %v833_v25 }
  0xd3   :  { %v516_v14 = vshrl.u32 %v498_v55, %v514_v39  ;;  %v519_v15 = vadd.s32 127, %v518_v31  ;;  %v529_v9 = vsel %vm444_vm10, %v528_v51, %v4158_v63  ;;  %v817_v39 = vld [vmem:[%s4595_s1 + $0x210] sm:$0xff]  ;;  %v2864_v1 = vpack.c.bf16 %v820_v32, %v819_v33  ;;  %v806_v32 = vld [vmem:[%s4595_s1 + $0x1b8] sm:$0xff] }
  0xd4   :  { %vm4287_vm4 = vcmp.le.f32.partialorder %v4650_v41, 0.7853982  ;;  %v4654_v21 = vxor.u32 2147483648, %v3547_v17  ;;  %v825_v41 = vld [vmem:[%s4595_s1 + $0x250] sm:$0xff] }
  0xd5   :  { %v517_v61 = vor.u32 %v516_v14, %v515_v52  ;;  %v520_v56 = vshll.u32 %v519_v15, 23  ;;  %2813 = vmatpush3.bf16.msra.mxu1 %v2812_v29  ;;  %v818_v52 = vld [vmem:[%s4595_s1 + $0x218] sm:$0xff]  ;;  %v4317_v26 = vsel %vm4287_vm4, 0, %v529_v9  ;;  %v835_v29 = vld [vmem:[%s4595_s1 + $0x2a0] sm:$0xff]  ;;  %v432_v15 = vand.u32 3, %v3432_v37  ;;  %v840_v37 = vld [vmem:[%s4595_s1 + $0x2c8] sm:$0xff] }
  0xd6   :  { %2815 = vmatprep.subr.bf16.mxu1 %v2814_v10  ;;  %v836_v10 = vld [vmem:[%s4595_s1 + $0x2a8] sm:$0xff]  ;;  %v2860_v22 = vpack.c.bf16 %v818_v52, %v817_v39  ;;  %v1358_v38 = vadd.s32 3, %v4317_v26  ;;  %v838_v14 = vld [vmem:[%s4595_s1 + $0x2b8] sm:$0xff]  ;;  %v2876_v39 = vpack.c.bf16 %v826_v47, %v825_v41  ;;  %v805_v33 = vld [vmem:[%s4595_s1 + $0x1b0] sm:$0xff] }
  0xd7   :  { %v521_v62 = vor.u32 4788187, %v520_v56  ;;  %v524_v45 = vcvt.s32.f32 %v517_v61  ;;  %v2862_v16 = vpack.c.bf16 %v836_v10, %v835_v29  ;;  %v822_v56 = vld [vmem:[%s4595_s1 + $0x238] sm:$0xff]  ;;  %vm434_vm11 = vcmp.eq.s32.totalorder %v432_v15, 0  ;;  %v827_v29 = vld [vmem:[%s4595_s1 + $0x260] sm:$0xff]  ;;  %v828_v10 = vld [vmem:[%s4595_s1 + $0x268] sm:$0xff] }
  0xd8   :  { %v2971_v12 = vpop.eup %2970  ;;  %v1359_v6 = vand.u32 3, %v1358_v38  ;;  %vm433_vm3 = vcmp.lt.s32.totalorder %v432_v15, 2  ;;  %v845_v38 = vld [vmem:[%s4595_s1 + $0x2f0] sm:$0xff]  ;;  %v814_v41 = vld [vmem:[%s4595_s1 + $0x1f8] sm:$0xff] }
  0xd9   :  { %v2973_v40 = vpop.eup %2972  ;;  %v644_v36 = vxor.u32 2147483648, %v2971_v12  ;;  %v522_v3 = vand.u32 2147483647, %v521_v62  ;;  %2817 = vmatpush3.bf16.msra.mxu1 %v2816_v35  ;;  %v821_v35 = vld [vmem:[%s4595_s1 + $0x230] sm:$0xff] }
  0xda   :  { %v641_v44 = vxor.u32 2147483648, %v2973_v40  ;;  %2819 = vmatprep.subr.bf16.mxu1 %v2818_v43  ;;  %v839_v43 = vld [vmem:[%s4595_s1 + $0x2c0] sm:$0xff]  ;;  %v2868_v62 = vpack.c.bf16 %v822_v56, %v821_v35  ;;  %vm1361_vm2 = vcmp.eq.s32.totalorder %v1359_v6, 0  ;;  %vm1360_vm5 = vcmp.lt.s32.totalorder %v1359_v6, 2  ;;  %v830_v35 = vld [vmem:[%s4595_s1 + $0x278] sm:$0xff] }
  0xdb   :  { %v1470_v5 = vsel %vm1468_vm15, %v644_v36, %v2973_v40  ;;  %v525_v48 = vmul.f32 %v524_v45, %v522_v3  ;;  %v645_v24 = vsel %vm643_vm12, %v644_v36, %v2973_v40  ;;  %v2870_v45 = vpack.c.bf16 %v840_v37, %v839_v43  ;;  %v784_v36 = vld [vmem:[%s4595_s1 + $0x108] sm:$0xff]  ;;  %v841_v3 = vld [vmem:[%s4595_s1 + $0x2d0] sm:$0xff]  ;;  %v790_v56 = vld [vmem:[%s4595_s1 + $0x138] sm:$0xff] }
  0xdc   :  { %v1467_v27 = vsel %vm1465_vm0, %v2971_v12, %v641_v44  ;;  %v642_v46 = vsel %vm640_vm14, %v2971_v12, %v641_v44  ;;  %vm1364_vm0 = vcmp.eq.s32.totalorder %v1359_v6, 2  ;;  %v4653_v12 = vxor.u32 2147483648, %v3555_v59  ;;  %v842_v44 = vld [vmem:[%s4595_s1 + $0x2d8] sm:$0xff] }
  0xdd   :  { %v1471_v55 = vsel %vm1464_vm8, %v1467_v27, %v1470_v5  ;;  %v526_v18 = vxor.u32 2147483648, %v525_v48  ;;  %v646_v23 = vsel %vm639_vm6, %v642_v46, %v645_v24  ;;  %2821 = vmatpush3.bf16.msra.mxu1 %v2820_v13  ;;  %v802_v13 = vld [vmem:[%s4595_s1 + $0x198] sm:$0xff]  ;;  %vm534_vm15 = vweird.f32 %v3754_v30  ;;  %v785_v24 = vld [vmem:[%s4595_s1 + $0x110] sm:$0xff] }
  0xde   :  { %v1472_v34 = vsel %vm637_vm13, nan, %v1471_v55  ;;  %2855 = vmatprep.subr.bf16.mxu1 %v2854_v7  ;;  %v647_v63 = vsel %vm637_vm13, nan, %v646_v23  ;;  %vm437_vm13 = vcmp.eq.s32.totalorder %v432_v15, 2  ;;  %v436_v51 = vsel %vm434_vm11, %v3547_v17, %v4653_v12  ;;  %v786_v46 = vld [vmem:[%s4595_s1 + $0x118] sm:$0xff]  ;;  %v843_v55 = vld [vmem:[%s4595_s1 + $0x2e0] sm:$0xff] }
  0xdf   :  { %1883 = vmatprep.mubr.f32.mxu0 %v1472_v34  ;;  %v527_v60 = vsel %vm444_vm10, %v526_v18, %v525_v48  ;;  %v439_v8 = vsel %vm437_vm13, %v4654_v21, %v3555_v59  ;;  %v801_v59 = vld [vmem:[%s4595_s1 + $0x190] sm:$0xff]  ;;  %v2872_v48 = vpack.c.bf16 %v824_v20, %v823_v54  ;;  %v2824_v2 = vpack.c.bf16 %v784_v36, %v783_v58  ;;  %v844_v18 = vld [vmem:[%s4595_s1 + $0x2e8] sm:$0xff]  ;;  %v803_v23 = vld [vmem:[%s4595_s1 + $0x1a0] sm:$0xff] }
  0xe0   :  { %v530_v31 = vsel %vm4287_vm4, %v3754_v30, %v527_v60  ;;  %2027 = vmatmul.mubr.f32.vlgmr.msra.gmra.mrb[4].mxu1 %v4126_v4  ;;  %v837_v4 = vld [vmem:[%s4595_s1 + $0x2b0] sm:$0xff]  ;;  %v440_v7 = vsel %vm433_vm3, %v436_v51, %v439_v8  ;;  %v2874_v27 = vpack.c.bf16 %v842_v44, %v841_v3  ;;  %v2826_v0 = vpack.c.bf16 %v802_v13, %v801_v59  ;;  %v804_v34 = vld [vmem:[%s4595_s1 + $0x1a8] sm:$0xff]  ;;  %v847_v12 = vld [vmem:[%s4595_s1 + $0x300] sm:$0xff] }
  0xe1   :  { %2974 = vcosq.f32 %v530_v31  ;;  %2857 = vmatpush3.bf16.msra.mxu1 %v2856_v57  ;;  %2166 = vmatprep.mubr.f32.mxu1 %v647_v63  ;;  %v2866_v61 = vpack.c.bf16 %v838_v14, %v837_v4  ;;  %v441_v60 = vsel %vm431_vm1, nan, %v440_v7  ;;  %v2828_v52 = vpack.c.bf16 %v786_v46, %v785_v24  ;;  %v787_v63 = vld [vmem:[%s4595_s1 + $0x120] sm:$0xff]  ;;  %v792_v8 = vld [vmem:[%s4595_s1 + $0x148] sm:$0xff]  ;;  %v793_v13 = vld [vmem:[%s4595_s1 + $0x150] sm:$0xff] }
  0xe2   :  { %2976 = vsinq.f32 %v530_v31  ;;  %2859 = vmatprep.subr.bf16.mxu1 %v2858_v49  ;;  %v535_v49 = vand.u32 3, %v4317_v26  ;;  %v2878_v31 = vpack.c.bf16 %v844_v18, %v843_v55  ;;  %v2830_v26 = vpack.c.bf16 %v804_v34, %v803_v23  ;;  %v791_v21 = vld [vmem:[%s4595_s1 + $0x140] sm:$0xff]  ;;  %v796_v24 = vld [vmem:[%s4595_s1 + $0x168] sm:$0xff]  ;;  %v798_v46 = vld [vmem:[%s4595_s1 + $0x178] sm:$0xff] }
  0xe3   :  { %v2880_v4 = vpack.c.bf16 %v828_v10, %v827_v29  ;;  %v2834_v6 = vpack.c.bf16 %v806_v32, %v805_v33  ;;  %v2840_v44 = vpack.c.bf16 %v792_v8, %v791_v21  ;;  %v811_v30 = vld [vmem:[%s4595_s1 + $0x1e0] sm:$0xff]  ;;  %v2252_v18 = vld [vmem:[%s4596_s4 + $0x8] sm:$0xff] }
  0xe4   :  { %vm537_vm1 = vcmp.eq.s32.totalorder %v535_v49, 0  ;;  %vm540_vm12 = vcmp.eq.s32.totalorder %v535_v49, 2  ;;  %vm536_vm14 = vcmp.lt.s32.totalorder %v535_v49, 2  ;;  %v2256_v57 = vld [vmem:[%s4596_s4 + $0x28] sm:$0xff]  ;;  %v2257_v49 = vld [vmem:[%s4596_s4 + $0x30] sm:$0xff]  ;;  %v2259_v10 = vld [vmem:[%s4596_s4 + $0x40] sm:$0xff] }
  0xe5   :  { %2861 = vmatpush3.bf16.msra.mxu1 %v2860_v22  ;;  %v788_v22 = vld [vmem:[%s4595_s1 + $0x128] sm:$0xff]  ;;  %v2263_v32 = vld [vmem:[%s4596_s4 + $0x60] sm:$0xff] }
  0xe6   :  { %2863 = vmatprep.subr.bf16.mxu1 %v2862_v16  ;;  %v846_v16 = vld [vmem:[%s4595_s1 + $0x2f8] sm:$0xff]  ;;  %v2832_v14 = vpack.c.bf16 %v788_v22, %v787_v63 }
  0xe7   :  { %v2882_v15 = vpack.c.bf16 %v846_v16, %v845_v38  ;;  %v2261_v38 = vld [vmem:[%s4596_s4 + $0x50] sm:$0xff]  ;;  %v2262_v16 = vld [vmem:[%s4596_s4 + $0x58] sm:$0xff] }
  0xe8   :  { %v2905_v33 = vpack.c.bf16 %v2262_v16, %v2261_v38 }
  0xe9   :  { %2865 = vmatpush3.bf16.msra.mxu1 %v2864_v1  ;;  %v829_v1 = vld [vmem:[%s4595_s1 + $0x270] sm:$0xff] }
  0xea   :  { %2867 = vmatprep.subr.bf16.mxu1 %v2866_v61  ;;  %v789_v61 = vld [vmem:[%s4595_s1 + $0x130] sm:$0xff]  ;;  %v2884_v58 = vpack.c.bf16 %v830_v35, %v829_v1  ;;  %v2266_v1 = vld [vmem:[%s4596_s4 + $0x78] sm:$0xff] }
  0xeb   :  { %v4352_v42 = vpop.eup %2974  ;;  %v2836_v54 = vpack.c.bf16 %v790_v56, %v789_v61 }
  0xec   :  { %v4369_v50 = vpop.eup %2976  ;;  %v541_v40 = vxor.u32 2147483648, %v4352_v42 }
  0xed   :  { %v538_v17 = vxor.u32 2147483648, %v4369_v50  ;;  %2869 = vmatpush3.bf16.msra.mxu1 %v2868_v62  ;;  %v807_v62 = vld [vmem:[%s4595_s1 + $0x1c0] sm:$0xff] }
  0xee   :  { %v1366_v5 = vsel %vm1364_vm0, %v541_v40, %v4369_v50  ;;  %2871 = vmatprep.subr.bf16.mxu1 %v2870_v45  ;;  %v542_v37 = vsel %vm540_vm12, %v541_v40, %v4369_v50  ;;  %v808_v45 = vld [vmem:[%s4595_s1 + $0x1c8] sm:$0xff]  ;;  %v809_v50 = vld [vmem:[%s4595_s1 + $0x1d0] sm:$0xff]  ;;  %v810_v40 = vld [vmem:[%s4595_s1 + $0x1d8] sm:$0xff] }
  0xef   :  { %v1363_v53 = vsel %vm1361_vm2, %v4352_v42, %v538_v17  ;;  %v539_v43 = vsel %vm537_vm1, %v4352_v42, %v538_v17  ;;  %v848_v42 = vld [vmem:[%s4595_s1 + $0x308] sm:$0xff]  ;;  %v2838_v51 = vpack.c.bf16 %v808_v45, %v807_v62  ;;  %v4656_v17 = vmov 0.0|0.0  }
  0xf0   :  { %v1367_v25 = vsel %vm1360_vm5, %v1363_v53, %v1366_v5  ;;  %v543_v20 = vsel %vm536_vm14, %v539_v43, %v542_v37  ;;  %v2887_v3 = vpack.c.bf16 %v848_v42, %v847_v12  ;;  %v2842_v59 = vpack.c.bf16 %v810_v40, %v809_v50  ;;  %v794_v5 = vld [vmem:[%s4595_s1 + $0x158] sm:$0xff] }
  0xf1   :  { %v1368_v9 = vsel %vm534_vm15, nan, %v1367_v25  ;;  %2873 = vmatpush3.bf16.msra.mxu1 %v2872_v48  ;;  %v544_v36 = vsel %vm534_vm15, nan, %v543_v20  ;;  %v812_v48 = vld [vmem:[%s4595_s1 + $0x1e8] sm:$0xff]  ;;  %v2844_v7 = vpack.c.bf16 %v794_v5, %v793_v13 }
  0xf2   :  { %1884 = vmatmul.mubr.f32.vlgmr.msra.gmra.mrb[2].mxu0 %v1368_v9  ;;  %2875 = vmatprep.subr.bf16.mxu1 %v2874_v27  ;;  %v2846_v53 = vpack.c.bf16 %v812_v48, %v811_v30  ;;  %v813_v27 = vld [vmem:[%s4595_s1 + $0x1f0] sm:$0xff]  ;;  %v2407_v48 = vld [vmem:[%s4597_s3] ss:$0 sm:$0xff] }
  0xf3   :  { %2825 = vmatpush3.bf16.msra.mxu0 %v2824_v2  ;;  %2096 = vmatprep.mubr.f32.mxu0 %v441_v60  ;;  %v795_v2 = vld [vmem:[%s4595_s1 + $0x160] sm:$0xff]  ;;  %v2850_v25 = vpack.c.bf16 %v814_v41, %v813_v27  ;;  %v2253_v9 = vld [vmem:[%s4596_s4 + $0x10] sm:$0xff] }
  0xf4   :  { %2827 = vmatprep.subr.bf16.mxu0 %v2826_v0  ;;  %v2848_v47 = vpack.c.bf16 %v796_v24, %v795_v2  ;;  %v797_v0 = vld [vmem:[%s4595_s1 + $0x170] sm:$0xff]  ;;  %v2408_v24 = vld [vmem:[%s4598_s5] ss:$0 sm:$0xff] }
  0xf5   :  { %2877 = vmatpush3.bf16.msra.mxu1 %v2876_v39  ;;  %v2852_v55 = vpack.c.bf16 %v798_v46, %v797_v0  ;;  %v2258_v39 = vld [vmem:[%s4596_s4 + $0x38] sm:$0xff] }
  0xf6   :  { %2879 = vmatprep.subr.bf16.mxu1 %v2878_v31  ;;  %v2899_v63 = vpack.c.bf16 %v2258_v39, %v2257_v49 }
  0xf7   :  { %2829 = vmatpush3.bf16.msra.mxu0 %v2828_v52 }
  0xf8   :  { %2831 = vmatprep.subr.bf16.mxu0 %v2830_v26  ;;  %v2260_v26 = vld [vmem:[%s4596_s4 + $0x48] sm:$0xff] }
  0xf9   :  { %2881 = vmatpush3.bf16.msra.mxu1 %v2880_v4  ;;  %v2902_v22 = vpack.c.bf16 %v2260_v26, %v2259_v10  ;;  %v2264_v4 = vld [vmem:[%s4596_s4 + $0x68] sm:$0xff] }
  0xfa   :  { %2883 = vmatprep.subr.bf16.mxu1 %v2882_v15  ;;  %v2265_v15 = vld [vmem:[%s4596_s4 + $0x70] sm:$0xff] }
  0xfb   :  { %2833 = vmatpush3.bf16.msra.mxu0 %v2832_v14  ;;  %v2908_v14 = vpack.c.bf16 %v2264_v4, %v2263_v32  ;;  %v2911_v35 = vpack.c.bf16 %v2266_v1, %v2265_v15 }
  0xfc   :  { %2835 = vmatprep.subr.bf16.mxu0 %v2834_v6 }
  0xfd   :  { %2885 = vmatpush3.bf16.msra.mxu1 %v2884_v58 }
  0xfe   :  { %2886 = vmatprep.subr.bf16.mxu1 %v4656_v17 }
  0xff   :  { %2837 = vmatpush3.bf16.msra.mxu0 %v2836_v54 }
 0x100   :  { %2839 = vmatprep.subr.bf16.mxu0 %v2838_v51  ;;  %2167 = vmatmul.mubr.f32.vlgmr.msra.gmra.mrb[6].mxu1 %v544_v36 }
 0x101   :  { %2888 = vmatpush3.bf16.msra.mxu1 %v2887_v3  ;;  %2653 = vmatprep.mubr.msk.f32.mxu1 %vm2985_vm7, %v2986_v11 }
 0x103   :  { %2841 = vmatpush3.bf16.msra.mxu0 %v2840_v44 }
 0x104   :  { %2843 = vmatprep.subr.bf16.mxu0 %v2842_v59  ;;  %2654 = vmatmul.mubr.msk.f32.vlgmr.msra.gmra.mrb[8].mxu1 %vm1675_vm9, %v4274_v28  ;;  %v2251_v28 = vld [vmem:[%s4596_s4] sm:$0xff] }
 0x105   :  { %v2890_v23 = vpack.c.bf16 %v2252_v18, %v2251_v28 }
 0x107   :  { %2845 = vmatpush3.bf16.msra.mxu0 %v2844_v7 }
 0x108   :  { %2847 = vmatprep.subr.bf16.mxu0 %v2846_v53 }
 0x10b   :  { %2849 = vmatpush3.bf16.msra.mxu0 %v2848_v47 }
 0x10c   :  { %2851 = vmatprep.subr.bf16.mxu0 %v2850_v25 }
 0x10f   :  { %2853 = vmatpush3.bf16.msra.mxu0 %v2852_v55 }
 0x110   :  { %2889 = vmatprep.subr.bf16.mxu0 %v4656_v17 }
 0x112   :  { %2097 = vmatmul.mubr.f32.vlgmr.msra.gmra.mrb[4].mxu0 %v4248_v19  ;;  %v2254_v19 = vld [vmem:[%s4596_s4 + $0x18] sm:$0xff] }
 0x113   :  { %2688 = vmatprep.mubr.msk.f32.mxu0 %vm2985_vm7, %v2986_v11  ;;  %2891 = vmatpush3.bf16.msra.mxu0 %v2890_v23  ;;  %v2893_v34 = vpack.c.bf16 %v2254_v19, %v2253_v9  ;;  %v2255_v11 = vld [vmem:[%s4596_s4 + $0x20] sm:$0xff] }
 0x114   :  { %2892 = vmatprep.subr.bf16.mxu0 %v4656_v17  ;;  %v2896_v60 = vpack.c.bf16 %v2256_v57, %v2255_v11 }
 0x117   :  { %2894 = vmatpush3.bf16.msra.mxu0 %v2893_v34 }
 0x118   :  { %2895 = vmatprep.subr.bf16.mxu0 %v4656_v17 }
 0x11b   :  { %2897 = vmatpush3.bf16.msra.mxu0 %v2896_v60 }
 0x11c   :  { %2898 = vmatprep.subr.bf16.mxu0 %v4656_v17 }
 0x11f   :  { %2900 = vmatpush3.bf16.msra.mxu0 %v2899_v63 }
 0x120   :  { %2901 = vmatprep.subr.bf16.mxu0 %v4656_v17 }
 0x123   :  { %2903 = vmatpush3.bf16.msra.mxu0 %v2902_v22 }
 0x124   :  { %2904 = vmatprep.subr.bf16.mxu0 %v4656_v17 }
 0x127   :  { %2906 = vmatpush3.bf16.msra.mxu0 %v2905_v33 }
 0x128   :  { %2907 = vmatprep.subr.bf16.mxu0 %v4656_v17 }
 0x12b   :  { %2909 = vmatpush3.bf16.msra.mxu0 %v2908_v14 }
 0x12c   :  { %2910 = vmatprep.subr.bf16.mxu0 %v4656_v17 }
 0x12f   :  { %2912 = vmatpush3.bf16.msra.mxu0 %v2911_v35 }
 0x158   :  { %v2441_v52 = vpop.f32.mrb[0].mxu0 }
 0x159   :  { %v2442_v31 = vpop.f32.mrb[1].mxu0 }
 0x15a   :  { %v2443_v29 = vadd.f32 %v2442_v31, %v2441_v52 }
 0x173   :  { %v2476_v6 = vpop.f32.mrb[0].mxu1 }
 0x174   :  { %v2477_v61 = vpop.f32.mrb[1].mxu1 }
 0x175   :  { %v2478_v56 = vadd.f32 %v2477_v61, %v2476_v6 }
 0x177   :  { %v1816_v43 = vadd.f32 %v2478_v56, %v2443_v29 }
 0x193   :  { %v1955_v37 = vpop.f32.mrb[2].mxu1 }
 0x194   :  { %v2648_v62 = vpop.f32.mrb[3].mxu1 }
 0x1b3   :  { %v2549_v45 = vpop.f32.mrb[4].mxu1 }
 0x1b4   :  { %v2550_v58 = vpop.f32.mrb[5].mxu1 }
 0x1b5   :  { %v2551_v54 = vadd.f32 %v2550_v58, %v2549_v45 }
 0x1c5   :  { %v2511_v20 = vpop.f32.mrb[2].mxu0 }
 0x1c6   :  { %v2512_v12 = vpop.f32.mrb[3].mxu0 }
 0x1c7   :  { %v2513_v42 = vadd.f32 %v2512_v12, %v2511_v20 }
 0x1c9   :  { %v1886_v51 = vadd.f32 %v2513_v42, %v1816_v43 }
 0x1cb   :  { %v1956_v21 = vadd.f32 %v1955_v37, %v1886_v51 }
 0x1cd   :  { %v2029_v8 = vadd.f32 %v2551_v54, %v1956_v21 }
 0x1d3   :  { %v2619_v50 = vpop.f32.mrb[6].mxu1 }
 0x1d4   :  { %v2620_v40 = vpop.f32.mrb[7].mxu1 }
 0x1d5   :  { %v2621_v36 = vadd.f32 %v2620_v40, %v2619_v50 }
 0x1d7   :  { %v2238_v3 = vpop.f32.mrb[8].mxu1 }
 0x1d8   :  { %v2655_v44 = vpop.f32.mrb[9].mxu1 }
 0x1e5   :  { %v2584_v17 = vpop.f32.mrb[4].mxu0 }
 0x1e6   :  { %v2585_v59 = vpop.f32.mrb[5].mxu0 }
 0x1e7   :  { %v2586_v13 = vadd.f32 %v2585_v59, %v2584_v17 }
 0x1e9   :  { %v2099_v5 = vadd.f32 %v2586_v13, %v2029_v8 }
 0x1eb   :  { %v2169_v30 = vadd.f32 %v2621_v36, %v2099_v5 }
 0x1ed   :  { %v2239_v7 = vadd.f32 %v2238_v3, %v2169_v30 }
 0x1ef   :  { %v2249_v53 = vadd.f32 %v2407_v48, %v2239_v7 }
 0x1f1   :  { %v2250_v2 = vmax.f32 %v2249_v53, 0.0 }
 0x1f3   :  { %2689 = vmatmul.mubr.f32.vlgmr.msra.gmra.mrb[6].mxu0 %v2250_v2 }
 0x2c6   :  { %v2340_v27 = vpop.f32.mrb[6].mxu0 }
 0x2c7   :  { %v2341_v41 = vadd.f32 %v2408_v24, %v2340_v27  ;;  %v2690_v47 = vpop.f32.mrb[7].mxu0 }
 0x2c9   :  { %2344 = vst [vmem:[%s4599_s6] sm:$0xff] %v2341_v41 }

</bundles_post_ra>
